<compile_context>
chip_gen: v7x
topology: tpu7x:2x2x1
jax: 0.10.0
libtpu: 0.0.40
codegen_flags: <defaults>
</compile_context>

<pallas_src>
import jax
import jax.numpy as jnp
from jax.scipy.linalg import block_diag
from jax.experimental import pallas as pl
from jax.experimental.pallas import tpu as pltpu

# ---------------- static config (small shapes implied by the module) --------
B          = 16    # number of nodes (batch)
NFEAT      = 32    # nfeat
HIDDEN     = 32    # hidden
NCLASS     = 16    # nclass
NUM_FEATS  = 3     # num_feats        (len(feats_dict))
NUM_LFEATS = 2     # num_label_feats  (len(layer_feats_dict))
LN_EPS     = 1e-5
BN_EPS     = 1e-5

# derived slab widths (all multiples of 8 -> tile-aligned static slices)
FIN  = NUM_FEATS * NFEAT      # 96  feat-path layer-1 input width
FH   = NUM_FEATS * HIDDEN     # 96  feat-path hidden slab width
LIN  = NUM_LFEATS * NCLASS    # 32  label-path layer-1 input width
LH   = NUM_LFEATS * HIDDEN    # 64  label-path hidden slab width
PADN = 128                    # lane-dense padded output width (>= NCLASS)

# PReLU negative slopes (scalar parameters; deterministic compile-time
# constants shared by kernel and reference).
ALPHA = dict(f1=0.25, f2=0.20, l1=0.15, l2=0.30,
             main=0.10, lr1=0.05, lf1=0.12, lf2=0.18)


# ---------------------------- kernel helpers ---------------------------------
def _prelu(x, a):
    return jnp.where(x >= 0.0, x, a * x)


def _group_ln(h, gamma_row, beta_row, inv_n):
    """nn.LayerNorm([C, H]) over a lane-flattened (TB, C*H) slab."""
    s1 = jnp.sum(h, axis=1, keepdims=True)
    s2 = jnp.sum(h * h, axis=1, keepdims=True)
    mean = s1 * inv_n
    var = s2 * inv_n - mean * mean
    rstd = jax.lax.rsqrt(var + LN_EPS)
    return (h - mean) * rstd * gamma_row + beta_row


# ------------------------------- the kernel ----------------------------------
def _kernel(feats_ref, lfeats_ref, lemb_ref,
            Wf_ref, rows_f_ref, Wl_ref, rows_l_ref,
            Wta_ref, Wtb_ref, rows_t_ref, out_ref):
    f32 = jnp.float32
    H, K = HIDDEN, NCLASS

    # ---- feat-path projection: block-diag matmul -> group LN -> PReLU (x2) --
    Wf1  = Wf_ref[0:FIN, :]                  # (FIN, FH) block-diag layer-1
    Wf2  = Wf_ref[FIN:FIN + FH, :]           # (FH, FH)  block-diag layer-2
    attf = Wf_ref[FIN + FH:FIN + 2 * FH, :]  # (FH, FH) cols [0:NUM_FEATS] valid

    h = jnp.dot(feats_ref[...], Wf1, preferred_element_type=f32) + rows_f_ref[0:1, :]
    h = _prelu(_group_ln(h, rows_f_ref[1:2, :], rows_f_ref[2:3, :], 1.0 / FH),
               ALPHA["f1"])
    h = jnp.dot(h, Wf2, preferred_element_type=f32) + rows_f_ref[3:4, :]
    hs_f = _prelu(_group_ln(h, rows_f_ref[4:5, :], rows_f_ref[5:6, :], 1.0 / FH),
                  ALPHA["f2"])                                   # (TB, FH)

    # ---- label-path projection ---------------------------------------------
    Wl1  = Wl_ref[0:LIN, :]                   # (LIN, LH)
    Wl2  = Wl_ref[LIN:LIN + LH, :]            # (LH, LH)
    attl = Wl_ref[LIN + LH:LIN + 2 * LH, :]   # (LH, LH) cols [0:NUM_LFEATS] valid

    g = jnp.dot(lfeats_ref[...], Wl1, preferred_element_type=f32) + rows_l_ref[0:1, :]
    g = _prelu(_group_ln(g, rows_l_ref[1:2, :], rows_l_ref[2:3, :], 1.0 / LH),
               ALPHA["l1"])
    g = jnp.dot(g, Wl2, preferred_element_type=f32) + rows_l_ref[3:4, :]
    hs_l = _prelu(_group_ln(g, rows_l_ref[4:5, :], rows_l_ref[5:6, :], 1.0 / LH),
                  ALPHA["l2"])                                   # (TB, LH)

    # ---- global attention pooling: softmax_c(sigmoid(h_c . w)) -------------
    # logits via one MXU matmul per path; sigmoid in (0,1) -> no max-subtract.
    lf = jnp.dot(hs_f, attf, preferred_element_type=f32)[:, 0:NUM_FEATS]   # (TB,3)
    ll = jnp.dot(hs_l, attl, preferred_element_type=f32)[:, 0:NUM_LFEATS]  # (TB,2)
    ef = jnp.exp(jax.nn.sigmoid(lf))
    el = jnp.exp(jax.nn.sigmoid(ll))
    z = jnp.sum(ef, axis=1, keepdims=True) + jnp.sum(el, axis=1, keepdims=True)
    # 5 scalars per row: exact divide (precision) instead of approx reciprocal.
    wf = ef / z
    wl = el / z

    out_r = hs_f[:, 0:H] * wf[:, 0:1]          # sum_meta=True accumulation
    for c in range(1, NUM_FEATS):
        out_r = out_r + hs_f[:, c * H:(c + 1) * H] * wf[:, c:c + 1]
    for c in range(NUM_LFEATS):
        out_r = out_r + hs_l[:, c * H:(c + 1) * H] * wl[:, c:c + 1]

    # ---- tail weights (packed slabs) ----------------------------------------
    cpW  = Wta_ref[0:H, :]                          # (H, H)
    lr1W = Wta_ref[H:2 * H, :]                      # (H, H)
    lf1W = Wta_ref[2 * H:2 * H + K, :]              # (K, H)
    lf2W = Wta_ref[2 * H + K:3 * H + K, :]          # (H, H)
    lr2W = Wtb_ref[:, 0:PADN]                       # (H, PADN) zero-padded
    lf3W = Wtb_ref[:, PADN:2 * PADN]                # (H, PADN) zero-padded

    # ---- concat_project_layer + PReLU, lr_output (BN eval folded) -----------
    x = _prelu(jnp.dot(out_r, cpW, preferred_element_type=f32)
               + rows_t_ref[0:1, 0:H], ALPHA["main"])
    x = _prelu(jnp.dot(x, lr1W, preferred_element_type=f32)
               + rows_t_ref[1:2, 0:H], ALPHA["lr1"])
    x = jnp.dot(x, lr2W, preferred_element_type=f32)
    x = x * rows_t_ref[2:3, :] + rows_t_ref[3:4, :]          # (TB, PADN)

    # ---- label residual branch (label_fc on label_emb) ----------------------
    y = _prelu(jnp.dot(lemb_ref[...], lf1W, preferred_element_type=f32)
               + rows_t_ref[4:5, 0:H], ALPHA["lf1"])
    y = _prelu(jnp.dot(y, lf2W, preferred_element_type=f32)
               + rows_t_ref[5:6, 0:H], ALPHA["lf2"])
    y = jnp.dot(y, lf3W, preferred_element_type=f32) + rows_t_ref[6:7, :]

    out_ref[...] = (x + y).astype(out_ref.dtype)             # lane-dense store


# --------------------------- parameter packing --------------------------------
def pack_params(p):
    """Assemble block-diagonal weights and row/weight slabs (trace-time only)."""
    f32 = jnp.float32
    H, K = HIDDEN, NCLASS

    def bd(W):  # (C, in, out) -> block-diag (C*in, C*out)
        return block_diag(*[W[c] for c in range(W.shape[0])])

    # feat path: [W1_bd ; W2_bd ; att_bd(padded)] stacked on sublanes
    attf = block_diag(*([p["attw"].T] * NUM_FEATS))                  # (FH, 3)
    attf_pad = jnp.zeros((FH, FH), f32).at[:, :NUM_FEATS].set(attf)
    Wf = jnp.concatenate([bd(p["W1f"]), bd(p["W2f"]), attf_pad], axis=0)
    rows_f = jnp.stack([p["b1f"].reshape(-1), p["g1f"].reshape(-1),
                        p["be1f"].reshape(-1), p["b2f"].reshape(-1),
                        p["g2f"].reshape(-1), p["be2f"].reshape(-1)], axis=0)

    # label path
    attl = block_diag(*([p["attw"].T] * NUM_LFEATS))                 # (LH, 2)
    attl_pad = jnp.zeros((LH, LH), f32).at[:, :NUM_LFEATS].set(attl)
    Wl = jnp.concatenate([bd(p["W1l"]), bd(p["W2l"]), attl_pad], axis=0)
    rows_l = jnp.stack([p["b1l"].reshape(-1), p["g1l"].reshape(-1),
                        p["be1l"].reshape(-1), p["b2l"].reshape(-1),
                        p["g2l"].reshape(-1), p["be2l"].reshape(-1)], axis=0)

    # tail: (K-in/H-in, H-out) weights stacked on sublanes
    Wta = jnp.concatenate([p["cpW"], p["lr1W"], p["lf1W"], p["lf2W"]], axis=0)

    def pad_cols(W):  # (r, K) -> (r, PADN), zeros elsewhere (lane-dense output)
        return jnp.zeros((W.shape[0], PADN), f32).at[:, :K].set(W)
    Wtb = jnp.concatenate([pad_cols(p["lr2W"]), pad_cols(p["lf3W"])], axis=1)

    def pad_row(v):  # (1, w) -> (PADN,), zero-padded
        v = v.reshape(-1)
        return jnp.zeros((PADN,), f32).at[:v.shape[0]].set(v)
    rows_t = jnp.stack([pad_row(p["cpb"]), pad_row(p["lr1b"]),
                        pad_row(p["bns"]), pad_row(p["bnb"]),
                        pad_row(p["lf1b"]), pad_row(p["lf2b"]),
                        pad_row(p["lf3b"])], axis=0)                 # (7, PADN)

    return dict(Wf=Wf, rows_f=rows_f, Wl=Wl, rows_l=rows_l,
                Wta=Wta, Wtb=Wtb, rows_t=rows_t)


# ------------------------------- wrapper --------------------------------------
def global_meta_aggregator(feats, label_feats, label_emb, packed):
    Bn = feats.shape[0]
    TB = Bn if Bn <= 256 else 256          # fill MXU rows; grid collapses for small B
    assert Bn % TB == 0
    grid = (Bn // TB,)

    feats_flat = feats.reshape(Bn, FIN)          # channel-flattened slabs
    lfeats_flat = label_feats.reshape(Bn, LIN)

    def batch_spec(width):
        return pl.BlockSpec((TB, width), lambda i: (i, 0))

    def full_spec(a):
        return pl.BlockSpec(a.shape, lambda i: (0, 0))

    order = ["Wf", "rows_f", "Wl", "rows_l", "Wta", "Wtb", "rows_t"]
    plist = [packed[k] for k in order]

    in_specs = ([batch_spec(FIN), batch_spec(LIN), batch_spec(label_emb.shape[1])]
                + [full_spec(a) for a in plist])

    out = pl.pallas_call(
        _kernel,
        out_shape=jax.ShapeDtypeStruct((Bn, PADN), jnp.float32),
        grid_spec=pltpu.PrefetchScalarGridSpec(
            num_scalar_prefetch=0,
            grid=grid,
            in_specs=in_specs,
            out_specs=pl.BlockSpec((TB, PADN), lambda i: (i, 0)),
        ),
        compiler_params=pltpu.CompilerParams(dimension_semantics=("parallel",)),
    )(feats_flat, lfeats_flat, label_emb, *plist)
    return out[:, :NCLASS]                 # drop lane padding outside the kernel


# --------------------------- deterministic init --------------------------------
def init_params(key):
    H, F, K = HIDDEN, NFEAT, NCLASS
    keys = iter(jax.random.split(key, 40))

    def xavier(shape, fan_in, fan_out, gain=2.0 ** 0.5):
        a = gain * (6.0 / (fan_in + fan_out)) ** 0.5
        return jax.random.uniform(next(keys), shape, jnp.float32, -a, a)

    def small(shape, scale=0.05):
        return scale * jax.random.normal(next(keys), shape, jnp.float32)

    p = {}
    # feat_project_layers (grouped 1x1 convs + LayerNorm affines)
    p["W1f"], p["b1f"] = xavier((NUM_FEATS, F, H), F, H), small((NUM_FEATS, H))
    p["g1f"], p["be1f"] = 1.0 + small((NUM_FEATS, H)), small((NUM_FEATS, H))
    p["W2f"], p["b2f"] = xavier((NUM_FEATS, H, H), H, H), small((NUM_FEATS, H))
    p["g2f"], p["be2f"] = 1.0 + small((NUM_FEATS, H)), small((NUM_FEATS, H))
    # label_feat_project_layers
    p["W1l"], p["b1l"] = xavier((NUM_LFEATS, K, H), K, H), small((NUM_LFEATS, H))
    p["g1l"], p["be1l"] = 1.0 + small((NUM_LFEATS, H)), small((NUM_LFEATS, H))
    p["W2l"], p["b2l"] = xavier((NUM_LFEATS, H, H), H, H), small((NUM_LFEATS, H))
    p["g2l"], p["be2l"] = 1.0 + small((NUM_LFEATS, H)), small((NUM_LFEATS, H))
    # attention weight self.weight (H, 1) stored transposed as (1, H)
    p["attw"] = xavier((1, H), H, 1, gain=1.0)
    # concat_project_layer: Linear(H, H)
    p["cpW"], p["cpb"] = xavier((H, H), H, H), small((1, H))
    # lr_output: Linear(H,H)+PReLU(+drop), Linear(H,K,no bias), BatchNorm1d(K)
    p["lr1W"], p["lr1b"] = xavier((H, H), H, H), small((1, H))
    p["lr2W"] = xavier((H, K), H, K)
    bn_w = 1.0 + small((K,))
    bn_b = small((K,))
    bn_rm = small((K,))
    bn_rv = 1.0 + jax.random.uniform(next(keys), (K,), jnp.float32, 0.0, 0.2)
    scale = bn_w / jnp.sqrt(bn_rv + BN_EPS)
    p["bns"] = scale.reshape(1, K)
    p["bnb"] = (bn_b - bn_rm * scale).reshape(1, K)
    # label_fc (n_layers_3 = 3): Linear(K,H)+PReLU, Linear(H,H)+PReLU, Linear(H,K)
    p["lf1W"], p["lf1b"] = xavier((K, H), K, H), small((1, H))
    p["lf2W"], p["lf2b"] = xavier((H, H), H, H), small((1, H))
    p["lf3W"], p["lf3b"] = xavier((H, K), H, K), small((1, K))
    return p


# ------------------------- plain-JAX reference (eval mode) ---------------------
def reference_forward(feats, lfeats, lemb, p):
    def prelu(x, a):
        return jnp.where(x >= 0, x, a * x)

    def ln(x, w, b):
        m = jnp.mean(x, axis=(1, 2), keepdims=True)
        v = jnp.mean((x - m) ** 2, axis=(1, 2), keepdims=True)
        return (x - m) / jnp.sqrt(v + LN_EPS) * w[None] + b[None]

    def proj(x, W1, b1, g1, be1, W2, b2, g2, be2, a1, a2):
        h = jnp.einsum('bcm,cmn->bcn', x, W1) + b1[None]
        h = prelu(ln(h, g1, be1), a1)
        h = jnp.einsum('bcm,cmn->bcn', h, W2) + b2[None]
        h = prelu(ln(h, g2, be2), a2)
        return h

    # full-f32 matmuls so the check against the Mosaic MXU path is meaningful
    with jax.default_matmul_precision("highest"):
        xf = proj(feats, p["W1f"], p["b1f"], p["g1f"], p["be1f"],
                  p["W2f"], p["b2f"], p["g2f"], p["be2f"],
                  ALPHA["f1"], ALPHA["f2"])
        xl = proj(lfeats, p["W1l"], p["b1l"], p["g1l"], p["be1l"],
                  p["W2l"], p["b2l"], p["g2l"], p["be2l"],
                  ALPHA["l1"], ALPHA["l2"])
        x = jnp.concatenate([xf, xl], axis=1)
        gv = jax.nn.softmax(
            jax.nn.sigmoid(jnp.einsum('bch,h->bc', x, p["attw"][0])), axis=-1)
        out_r = jnp.sum(x * gv[:, :, None], axis=1)
        h = prelu(out_r @ p["cpW"] + p["cpb"], ALPHA["main"])
        h = prelu(h @ p["lr1W"] + p["lr1b"], ALPHA["lr1"])
        h = (h @ p["lr2W"]) * p["bns"] + p["bnb"]
        y = prelu(lemb @ p["lf1W"] + p["lf1b"], ALPHA["lf1"])
        y = prelu(y @ p["lf2W"] + p["lf2b"], ALPHA["lf2"])
        y = y @ p["lf3W"] + p["lf3b"]
        return h + y


# ----------------------------------- main ------------------------------------
if __name__ == "__main__":
    root = jax.random.PRNGKey(0)
    kp, kf, kl, ke = jax.random.split(root, 4)
    params = init_params(kp)
    packed = pack_params(params)

    # feats_dict / layer_feats_dict stacked along channel dim (glue in JAX).
    feats = jax.random.normal(kf, (B, NUM_FEATS, NFEAT), jnp.float32)
    label_feats = jax.random.normal(kl, (B, NUM_LFEATS, NCLASS), jnp.float32)
    label_emb = jax.random.normal(ke, (B, NCLASS), jnp.float32)

    fwd = jax.jit(global_meta_aggregator)
    out = jax.block_until_ready(fwd(feats, label_feats, label_emb, packed))
    assert out.shape == (B, NCLASS) and out.dtype == jnp.float32

    ref = reference_forward(feats, label_feats, label_emb, params)
    if not jnp.allclose(out, ref, atol=2e-3, rtol=2e-3):
        max_err = float(jnp.max(jnp.abs(out - ref)))
        raise AssertionError(f"Pallas kernel mismatch vs reference: {max_err}")

    print("KERNEL_OK")
</pallas_src>

<mosaic_0001>
module attributes {stable_mosaic.version = 11 : i64} {
  func.func @_kernel(%arg0: i32, %arg1: memref<16x96xf32, #tpu.memory_space<vmem>>, %arg2: memref<16x32xf32, #tpu.memory_space<vmem>>, %arg3: memref<16x16xf32, #tpu.memory_space<vmem>>, %arg4: memref<288x96xf32, #tpu.memory_space<vmem>>, %arg5: memref<6x96xf32, #tpu.memory_space<vmem>>, %arg6: memref<160x64xf32, #tpu.memory_space<vmem>>, %arg7: memref<6x64xf32, #tpu.memory_space<vmem>>, %arg8: memref<112x32xf32, #tpu.memory_space<vmem>>, %arg9: memref<32x256xf32, #tpu.memory_space<vmem>>, %arg10: memref<7x128xf32, #tpu.memory_space<vmem>>, %arg11: memref<16x128xf32, #tpu.memory_space<vmem>>) attributes {dimension_semantics = [#tpu.dimension_semantics<parallel>], iteration_bounds = array<i64: 1>, scalar_prefetch = 0 : i64, scratch_operands = 0 : i64, tpu.core_type = #tpu.core_type<tc>, window_params = [{transform_indices = @transform_0, window_bounds = array<i64: 16, 96>}, {transform_indices = @transform_1, window_bounds = array<i64: 16, 32>}, {transform_indices = @transform_2, window_bounds = array<i64: 16, 16>}, {pipeline_mode = #tpu.pipeline_mode<synchronous>, transform_indices = @transform_3, window_bounds = array<i64: 288, 96>}, {pipeline_mode = #tpu.pipeline_mode<synchronous>, transform_indices = @transform_4, window_bounds = array<i64: 6, 96>}, {pipeline_mode = #tpu.pipeline_mode<synchronous>, transform_indices = @transform_5, window_bounds = array<i64: 160, 64>}, {pipeline_mode = #tpu.pipeline_mode<synchronous>, transform_indices = @transform_6, window_bounds = array<i64: 6, 64>}, {pipeline_mode = #tpu.pipeline_mode<synchronous>, transform_indices = @transform_7, window_bounds = array<i64: 112, 32>}, {pipeline_mode = #tpu.pipeline_mode<synchronous>, transform_indices = @transform_8, window_bounds = array<i64: 32, 256>}, {pipeline_mode = #tpu.pipeline_mode<synchronous>, transform_indices = @transform_9, window_bounds = array<i64: 7, 128>}, {transform_indices = @transform_10, window_bounds = array<i64: 16, 128>}]} {
    %c0 = arith.constant 0 : index
    %c0_0 = arith.constant 0 : index
    %0 = vector.load %arg4[%c0, %c0_0] : memref<288x96xf32, #tpu.memory_space<vmem>>, vector<96x96xf32>
    %c96 = arith.constant 96 : index
    %c0_1 = arith.constant 0 : index
    %1 = vector.load %arg4[%c96, %c0_1] : memref<288x96xf32, #tpu.memory_space<vmem>>, vector<96x96xf32>
    %c192 = arith.constant 192 : index
    %c0_2 = arith.constant 0 : index
    %2 = vector.load %arg4[%c192, %c0_2] : memref<288x96xf32, #tpu.memory_space<vmem>>, vector<96x96xf32>
    %c0_3 = arith.constant 0 : index
    %c0_4 = arith.constant 0 : index
    %3 = vector.load %arg1[%c0_3, %c0_4] : memref<16x96xf32, #tpu.memory_space<vmem>>, vector<16x96xf32>
    %cst = arith.constant dense<0.000000e+00> : vector<16x96xf32>
    %4 = tpu.matmul %3, %0, %cst {dimension_numbers = #tpu.dot_dimension_numbers<[1], [0], [0], [1], [0, 0, 1, 1], [], []>} : vector<16x96xf32>, vector<96x96xf32>, vector<16x96xf32> -> vector<16x96xf32>
    %c0_5 = arith.constant 0 : index
    %c0_6 = arith.constant 0 : index
    %5 = vector.load %arg5[%c0_5, %c0_6] : memref<6x96xf32, #tpu.memory_space<vmem>>, vector<1x96xf32>
    %6 = vector.broadcast %5 : vector<1x96xf32> to vector<16x96xf32>
    %7 = arith.addf %4, %6 : vector<16x96xf32>
    %c1 = arith.constant 1 : index
    %c0_7 = arith.constant 0 : index
    %8 = vector.load %arg5[%c1, %c0_7] : memref<6x96xf32, #tpu.memory_space<vmem>>, vector<1x96xf32>
    %c2 = arith.constant 2 : index
    %c0_8 = arith.constant 0 : index
    %9 = vector.load %arg5[%c2, %c0_8] : memref<6x96xf32, #tpu.memory_space<vmem>>, vector<1x96xf32>
    %cst_9 = arith.constant dense<0.000000e+00> : vector<16xf32>
    %10 = vector.multi_reduction <add>, %7, %cst_9 [1] : vector<16x96xf32> to vector<16xf32>
    %11 = vector.shape_cast %10 : vector<16xf32> to vector<16x1xf32>
    %12 = arith.mulf %7, %7 : vector<16x96xf32>
    %cst_10 = arith.constant dense<0.000000e+00> : vector<16xf32>
    %13 = vector.multi_reduction <add>, %12, %cst_10 [1] : vector<16x96xf32> to vector<16xf32>
    %14 = vector.shape_cast %13 : vector<16xf32> to vector<16x1xf32>
    %cst_11 = arith.constant 0.010416667 : f32
    %15 = vector.broadcast %cst_11 : f32 to vector<16x1xf32>
    %16 = arith.mulf %11, %15 : vector<16x1xf32>
    %cst_12 = arith.constant 0.010416667 : f32
    %17 = vector.broadcast %cst_12 : f32 to vector<16x1xf32>
    %18 = arith.mulf %14, %17 : vector<16x1xf32>
    %19 = arith.mulf %16, %16 : vector<16x1xf32>
    %20 = arith.subf %18, %19 : vector<16x1xf32>
    %cst_13 = arith.constant 9.99999974E-6 : f32
    %21 = vector.broadcast %cst_13 : f32 to vector<16x1xf32>
    %22 = arith.addf %20, %21 : vector<16x1xf32>
    %23 = math.rsqrt %22 : vector<16x1xf32>
    %24 = vector.broadcast %16 : vector<16x1xf32> to vector<16x96xf32>
    %25 = arith.subf %7, %24 : vector<16x96xf32>
    %26 = vector.broadcast %23 : vector<16x1xf32> to vector<16x96xf32>
    %27 = arith.mulf %25, %26 : vector<16x96xf32>
    %28 = vector.broadcast %8 : vector<1x96xf32> to vector<16x96xf32>
    %29 = arith.mulf %27, %28 : vector<16x96xf32>
    %30 = vector.broadcast %9 : vector<1x96xf32> to vector<16x96xf32>
    %31 = arith.addf %29, %30 : vector<16x96xf32>
    %cst_14 = arith.constant 0.000000e+00 : f32
    %32 = vector.broadcast %cst_14 : f32 to vector<16x96xf32>
    %33 = arith.cmpf oge, %31, %32 : vector<16x96xf32>
    %cst_15 = arith.constant 2.500000e-01 : f32
    %34 = vector.broadcast %cst_15 : f32 to vector<16x96xf32>
    %35 = arith.mulf %34, %31 : vector<16x96xf32>
    %36 = arith.select %33, %31, %35 : vector<16x96xi1>, vector<16x96xf32>
    %cst_16 = arith.constant dense<0.000000e+00> : vector<16x96xf32>
    %37 = tpu.matmul %36, %1, %cst_16 {dimension_numbers = #tpu.dot_dimension_numbers<[1], [0], [0], [1], [0, 0, 1, 1], [], []>} : vector<16x96xf32>, vector<96x96xf32>, vector<16x96xf32> -> vector<16x96xf32>
    %c3 = arith.constant 3 : index
    %c0_17 = arith.constant 0 : index
    %38 = vector.load %arg5[%c3, %c0_17] : memref<6x96xf32, #tpu.memory_space<vmem>>, vector<1x96xf32>
    %39 = vector.broadcast %38 : vector<1x96xf32> to vector<16x96xf32>
    %40 = arith.addf %37, %39 : vector<16x96xf32>
    %c4 = arith.constant 4 : index
    %c0_18 = arith.constant 0 : index
    %41 = vector.load %arg5[%c4, %c0_18] : memref<6x96xf32, #tpu.memory_space<vmem>>, vector<1x96xf32>
    %c5 = arith.constant 5 : index
    %c0_19 = arith.constant 0 : index
    %42 = vector.load %arg5[%c5, %c0_19] : memref<6x96xf32, #tpu.memory_space<vmem>>, vector<1x96xf32>
    %cst_20 = arith.constant dense<0.000000e+00> : vector<16xf32>
    %43 = vector.multi_reduction <add>, %40, %cst_20 [1] : vector<16x96xf32> to vector<16xf32>
    %44 = vector.shape_cast %43 : vector<16xf32> to vector<16x1xf32>
    %45 = arith.mulf %40, %40 : vector<16x96xf32>
    %cst_21 = arith.constant dense<0.000000e+00> : vector<16xf32>
    %46 = vector.multi_reduction <add>, %45, %cst_21 [1] : vector<16x96xf32> to vector<16xf32>
    %47 = vector.shape_cast %46 : vector<16xf32> to vector<16x1xf32>
    %cst_22 = arith.constant 0.010416667 : f32
    %48 = vector.broadcast %cst_22 : f32 to vector<16x1xf32>
    %49 = arith.mulf %44, %48 : vector<16x1xf32>
    %cst_23 = arith.constant 0.010416667 : f32
    %50 = vector.broadcast %cst_23 : f32 to vector<16x1xf32>
    %51 = arith.mulf %47, %50 : vector<16x1xf32>
    %52 = arith.mulf %49, %49 : vector<16x1xf32>
    %53 = arith.subf %51, %52 : vector<16x1xf32>
    %cst_24 = arith.constant 9.99999974E-6 : f32
    %54 = vector.broadcast %cst_24 : f32 to vector<16x1xf32>
    %55 = arith.addf %53, %54 : vector<16x1xf32>
    %56 = math.rsqrt %55 : vector<16x1xf32>
    %57 = vector.broadcast %49 : vector<16x1xf32> to vector<16x96xf32>
    %58 = arith.subf %40, %57 : vector<16x96xf32>
    %59 = vector.broadcast %56 : vector<16x1xf32> to vector<16x96xf32>
    %60 = arith.mulf %58, %59 : vector<16x96xf32>
    %61 = vector.broadcast %41 : vector<1x96xf32> to vector<16x96xf32>
    %62 = arith.mulf %60, %61 : vector<16x96xf32>
    %63 = vector.broadcast %42 : vector<1x96xf32> to vector<16x96xf32>
    %64 = arith.addf %62, %63 : vector<16x96xf32>
    %cst_25 = arith.constant 0.000000e+00 : f32
    %65 = vector.broadcast %cst_25 : f32 to vector<16x96xf32>
    %66 = arith.cmpf oge, %64, %65 : vector<16x96xf32>
    %cst_26 = arith.constant 2.000000e-01 : f32
    %67 = vector.broadcast %cst_26 : f32 to vector<16x96xf32>
    %68 = arith.mulf %67, %64 : vector<16x96xf32>
    %69 = arith.select %66, %64, %68 : vector<16x96xi1>, vector<16x96xf32>
    %c0_27 = arith.constant 0 : index
    %c0_28 = arith.constant 0 : index
    %70 = vector.load %arg6[%c0_27, %c0_28] : memref<160x64xf32, #tpu.memory_space<vmem>>, vector<32x64xf32>
    %c32 = arith.constant 32 : index
    %c0_29 = arith.constant 0 : index
    %71 = vector.load %arg6[%c32, %c0_29] : memref<160x64xf32, #tpu.memory_space<vmem>>, vector<64x64xf32>
    %c96_30 = arith.constant 96 : index
    %c0_31 = arith.constant 0 : index
    %72 = vector.load %arg6[%c96_30, %c0_31] : memref<160x64xf32, #tpu.memory_space<vmem>>, vector<64x64xf32>
    %c0_32 = arith.constant 0 : index
    %c0_33 = arith.constant 0 : index
    %73 = vector.load %arg2[%c0_32, %c0_33] : memref<16x32xf32, #tpu.memory_space<vmem>>, vector<16x32xf32>
    %cst_34 = arith.constant dense<0.000000e+00> : vector<16x64xf32>
    %74 = tpu.matmul %73, %70, %cst_34 {dimension_numbers = #tpu.dot_dimension_numbers<[1], [0], [0], [1], [0, 0, 1, 1], [], []>} : vector<16x32xf32>, vector<32x64xf32>, vector<16x64xf32> -> vector<16x64xf32>
    %c0_35 = arith.constant 0 : index
    %c0_36 = arith.constant 0 : index
    %75 = vector.load %arg7[%c0_35, %c0_36] : memref<6x64xf32, #tpu.memory_space<vmem>>, vector<1x64xf32>
    %76 = vector.broadcast %75 : vector<1x64xf32> to vector<16x64xf32>
    %77 = arith.addf %74, %76 : vector<16x64xf32>
    %c1_37 = arith.constant 1 : index
    %c0_38 = arith.constant 0 : index
    %78 = vector.load %arg7[%c1_37, %c0_38] : memref<6x64xf32, #tpu.memory_space<vmem>>, vector<1x64xf32>
    %c2_39 = arith.constant 2 : index
    %c0_40 = arith.constant 0 : index
    %79 = vector.load %arg7[%c2_39, %c0_40] : memref<6x64xf32, #tpu.memory_space<vmem>>, vector<1x64xf32>
    %cst_41 = arith.constant dense<0.000000e+00> : vector<16xf32>
    %80 = vector.multi_reduction <add>, %77, %cst_41 [1] : vector<16x64xf32> to vector<16xf32>
    %81 = vector.shape_cast %80 : vector<16xf32> to vector<16x1xf32>
    %82 = arith.mulf %77, %77 : vector<16x64xf32>
    %cst_42 = arith.constant dense<0.000000e+00> : vector<16xf32>
    %83 = vector.multi_reduction <add>, %82, %cst_42 [1] : vector<16x64xf32> to vector<16xf32>
    %84 = vector.shape_cast %83 : vector<16xf32> to vector<16x1xf32>
    %cst_43 = arith.constant 1.562500e-02 : f32
    %85 = vector.broadcast %cst_43 : f32 to vector<16x1xf32>
    %86 = arith.mulf %81, %85 : vector<16x1xf32>
    %cst_44 = arith.constant 1.562500e-02 : f32
    %87 = vector.broadcast %cst_44 : f32 to vector<16x1xf32>
    %88 = arith.mulf %84, %87 : vector<16x1xf32>
    %89 = arith.mulf %86, %86 : vector<16x1xf32>
    %90 = arith.subf %88, %89 : vector<16x1xf32>
    %cst_45 = arith.constant 9.99999974E-6 : f32
    %91 = vector.broadcast %cst_45 : f32 to vector<16x1xf32>
    %92 = arith.addf %90, %91 : vector<16x1xf32>
    %93 = math.rsqrt %92 : vector<16x1xf32>
    %94 = vector.broadcast %86 : vector<16x1xf32> to vector<16x64xf32>
    %95 = arith.subf %77, %94 : vector<16x64xf32>
    %96 = vector.broadcast %93 : vector<16x1xf32> to vector<16x64xf32>
    %97 = arith.mulf %95, %96 : vector<16x64xf32>
    %98 = vector.broadcast %78 : vector<1x64xf32> to vector<16x64xf32>
    %99 = arith.mulf %97, %98 : vector<16x64xf32>
    %100 = vector.broadcast %79 : vector<1x64xf32> to vector<16x64xf32>
    %101 = arith.addf %99, %100 : vector<16x64xf32>
    %cst_46 = arith.constant 0.000000e+00 : f32
    %102 = vector.broadcast %cst_46 : f32 to vector<16x64xf32>
    %103 = arith.cmpf oge, %101, %102 : vector<16x64xf32>
    %cst_47 = arith.constant 1.500000e-01 : f32
    %104 = vector.broadcast %cst_47 : f32 to vector<16x64xf32>
    %105 = arith.mulf %104, %101 : vector<16x64xf32>
    %106 = arith.select %103, %101, %105 : vector<16x64xi1>, vector<16x64xf32>
    %cst_48 = arith.constant dense<0.000000e+00> : vector<16x64xf32>
    %107 = tpu.matmul %106, %71, %cst_48 {dimension_numbers = #tpu.dot_dimension_numbers<[1], [0], [0], [1], [0, 0, 1, 1], [], []>} : vector<16x64xf32>, vector<64x64xf32>, vector<16x64xf32> -> vector<16x64xf32>
    %c3_49 = arith.constant 3 : index
    %c0_50 = arith.constant 0 : index
    %108 = vector.load %arg7[%c3_49, %c0_50] : memref<6x64xf32, #tpu.memory_space<vmem>>, vector<1x64xf32>
    %109 = vector.broadcast %108 : vector<1x64xf32> to vector<16x64xf32>
    %110 = arith.addf %107, %109 : vector<16x64xf32>
    %c4_51 = arith.constant 4 : index
    %c0_52 = arith.constant 0 : index
    %111 = vector.load %arg7[%c4_51, %c0_52] : memref<6x64xf32, #tpu.memory_space<vmem>>, vector<1x64xf32>
    %c5_53 = arith.constant 5 : index
    %c0_54 = arith.constant 0 : index
    %112 = vector.load %arg7[%c5_53, %c0_54] : memref<6x64xf32, #tpu.memory_space<vmem>>, vector<1x64xf32>
    %cst_55 = arith.constant dense<0.000000e+00> : vector<16xf32>
    %113 = vector.multi_reduction <add>, %110, %cst_55 [1] : vector<16x64xf32> to vector<16xf32>
    %114 = vector.shape_cast %113 : vector<16xf32> to vector<16x1xf32>
    %115 = arith.mulf %110, %110 : vector<16x64xf32>
    %cst_56 = arith.constant dense<0.000000e+00> : vector<16xf32>
    %116 = vector.multi_reduction <add>, %115, %cst_56 [1] : vector<16x64xf32> to vector<16xf32>
    %117 = vector.shape_cast %116 : vector<16xf32> to vector<16x1xf32>
    %cst_57 = arith.constant 1.562500e-02 : f32
    %118 = vector.broadcast %cst_57 : f32 to vector<16x1xf32>
    %119 = arith.mulf %114, %118 : vector<16x1xf32>
    %cst_58 = arith.constant 1.562500e-02 : f32
    %120 = vector.broadcast %cst_58 : f32 to vector<16x1xf32>
    %121 = arith.mulf %117, %120 : vector<16x1xf32>
    %122 = arith.mulf %119, %119 : vector<16x1xf32>
    %123 = arith.subf %121, %122 : vector<16x1xf32>
    %cst_59 = arith.constant 9.99999974E-6 : f32
    %124 = vector.broadcast %cst_59 : f32 to vector<16x1xf32>
    %125 = arith.addf %123, %124 : vector<16x1xf32>
    %126 = math.rsqrt %125 : vector<16x1xf32>
    %127 = vector.broadcast %119 : vector<16x1xf32> to vector<16x64xf32>
    %128 = arith.subf %110, %127 : vector<16x64xf32>
    %129 = vector.broadcast %126 : vector<16x1xf32> to vector<16x64xf32>
    %130 = arith.mulf %128, %129 : vector<16x64xf32>
    %131 = vector.broadcast %111 : vector<1x64xf32> to vector<16x64xf32>
    %132 = arith.mulf %130, %131 : vector<16x64xf32>
    %133 = vector.broadcast %112 : vector<1x64xf32> to vector<16x64xf32>
    %134 = arith.addf %132, %133 : vector<16x64xf32>
    %cst_60 = arith.constant 0.000000e+00 : f32
    %135 = vector.broadcast %cst_60 : f32 to vector<16x64xf32>
    %136 = arith.cmpf oge, %134, %135 : vector<16x64xf32>
    %cst_61 = arith.constant 3.000000e-01 : f32
    %137 = vector.broadcast %cst_61 : f32 to vector<16x64xf32>
    %138 = arith.mulf %137, %134 : vector<16x64xf32>
    %139 = arith.select %136, %134, %138 : vector<16x64xi1>, vector<16x64xf32>
    %cst_62 = arith.constant dense<0.000000e+00> : vector<16x96xf32>
    %140 = tpu.matmul %69, %2, %cst_62 {dimension_numbers = #tpu.dot_dimension_numbers<[1], [0], [0], [1], [0, 0, 1, 1], [], []>} : vector<16x96xf32>, vector<96x96xf32>, vector<16x96xf32> -> vector<16x96xf32>
    %141 = vector.extract_strided_slice %140 {offsets = [0, 0], sizes = [16, 3], strides = [1, 1]} : vector<16x96xf32> to vector<16x3xf32>
    %cst_63 = arith.constant dense<0.000000e+00> : vector<16x64xf32>
    %142 = tpu.matmul %139, %72, %cst_63 {dimension_numbers = #tpu.dot_dimension_numbers<[1], [0], [0], [1], [0, 0, 1, 1], [], []>} : vector<16x64xf32>, vector<64x64xf32>, vector<16x64xf32> -> vector<16x64xf32>
    %143 = vector.extract_strided_slice %142 {offsets = [0, 0], sizes = [16, 2], strides = [1, 1]} : vector<16x64xf32> to vector<16x2xf32>
    %144 = arith.negf %141 : vector<16x3xf32>
    %145 = math.exp %144 : vector<16x3xf32>
    %cst_64 = arith.constant 1.000000e+00 : f32
    %146 = vector.broadcast %cst_64 : f32 to vector<16x3xf32>
    %147 = arith.addf %146, %145 : vector<16x3xf32>
    %148 = arith.divf %146, %147 : vector<16x3xf32>
    %149 = math.exp %148 : vector<16x3xf32>
    %150 = arith.negf %143 : vector<16x2xf32>
    %151 = math.exp %150 : vector<16x2xf32>
    %cst_65 = arith.constant 1.000000e+00 : f32
    %152 = vector.broadcast %cst_65 : f32 to vector<16x2xf32>
    %153 = arith.addf %152, %151 : vector<16x2xf32>
    %154 = arith.divf %152, %153 : vector<16x2xf32>
    %155 = math.exp %154 : vector<16x2xf32>
    %cst_66 = arith.constant dense<0.000000e+00> : vector<16xf32>
    %156 = vector.multi_reduction <add>, %149, %cst_66 [1] : vector<16x3xf32> to vector<16xf32>
    %157 = vector.shape_cast %156 : vector<16xf32> to vector<16x1xf32>
    %cst_67 = arith.constant dense<0.000000e+00> : vector<16xf32>
    %158 = vector.multi_reduction <add>, %155, %cst_67 [1] : vector<16x2xf32> to vector<16xf32>
    %159 = vector.shape_cast %158 : vector<16xf32> to vector<16x1xf32>
    %160 = arith.addf %157, %159 : vector<16x1xf32>
    %161 = vector.broadcast %160 : vector<16x1xf32> to vector<16x3xf32>
    %162 = arith.divf %149, %161 : vector<16x3xf32>
    %163 = vector.broadcast %160 : vector<16x1xf32> to vector<16x2xf32>
    %164 = arith.divf %155, %163 : vector<16x2xf32>
    %165 = vector.extract_strided_slice %69 {offsets = [0, 0], sizes = [16, 32], strides = [1, 1]} : vector<16x96xf32> to vector<16x32xf32>
    %166 = vector.extract_strided_slice %162 {offsets = [0, 0], sizes = [16, 1], strides = [1, 1]} : vector<16x3xf32> to vector<16x1xf32>
    %167 = vector.broadcast %166 : vector<16x1xf32> to vector<16x32xf32>
    %168 = arith.mulf %165, %167 : vector<16x32xf32>
    %169 = vector.extract_strided_slice %69 {offsets = [0, 32], sizes = [16, 32], strides = [1, 1]} : vector<16x96xf32> to vector<16x32xf32>
    %170 = vector.extract_strided_slice %162 {offsets = [0, 1], sizes = [16, 1], strides = [1, 1]} : vector<16x3xf32> to vector<16x1xf32>
    %171 = vector.broadcast %170 : vector<16x1xf32> to vector<16x32xf32>
    %172 = arith.mulf %169, %171 : vector<16x32xf32>
    %173 = arith.addf %168, %172 : vector<16x32xf32>
    %174 = vector.extract_strided_slice %69 {offsets = [0, 64], sizes = [16, 32], strides = [1, 1]} : vector<16x96xf32> to vector<16x32xf32>
    %175 = vector.extract_strided_slice %162 {offsets = [0, 2], sizes = [16, 1], strides = [1, 1]} : vector<16x3xf32> to vector<16x1xf32>
    %176 = vector.broadcast %175 : vector<16x1xf32> to vector<16x32xf32>
    %177 = arith.mulf %174, %176 : vector<16x32xf32>
    %178 = arith.addf %173, %177 : vector<16x32xf32>
    %179 = vector.extract_strided_slice %139 {offsets = [0, 0], sizes = [16, 32], strides = [1, 1]} : vector<16x64xf32> to vector<16x32xf32>
    %180 = vector.extract_strided_slice %164 {offsets = [0, 0], sizes = [16, 1], strides = [1, 1]} : vector<16x2xf32> to vector<16x1xf32>
    %181 = vector.broadcast %180 : vector<16x1xf32> to vector<16x32xf32>
    %182 = arith.mulf %179, %181 : vector<16x32xf32>
    %183 = arith.addf %178, %182 : vector<16x32xf32>
    %184 = vector.extract_strided_slice %139 {offsets = [0, 32], sizes = [16, 32], strides = [1, 1]} : vector<16x64xf32> to vector<16x32xf32>
    %185 = vector.extract_strided_slice %164 {offsets = [0, 1], sizes = [16, 1], strides = [1, 1]} : vector<16x2xf32> to vector<16x1xf32>
    %186 = vector.broadcast %185 : vector<16x1xf32> to vector<16x32xf32>
    %187 = arith.mulf %184, %186 : vector<16x32xf32>
    %188 = arith.addf %183, %187 : vector<16x32xf32>
    %c0_68 = arith.constant 0 : index
    %c0_69 = arith.constant 0 : index
    %189 = vector.load %arg8[%c0_68, %c0_69] : memref<112x32xf32, #tpu.memory_space<vmem>>, vector<32x32xf32>
    %c32_70 = arith.constant 32 : index
    %c0_71 = arith.constant 0 : index
    %190 = vector.load %arg8[%c32_70, %c0_71] : memref<112x32xf32, #tpu.memory_space<vmem>>, vector<32x32xf32>
    %c64 = arith.constant 64 : index
    %c0_72 = arith.constant 0 : index
    %191 = vector.load %arg8[%c64, %c0_72] : memref<112x32xf32, #tpu.memory_space<vmem>>, vector<16x32xf32>
    %c80 = arith.constant 80 : index
    %c0_73 = arith.constant 0 : index
    %192 = vector.load %arg8[%c80, %c0_73] : memref<112x32xf32, #tpu.memory_space<vmem>>, vector<32x32xf32>
    %c0_74 = arith.constant 0 : index
    %c0_75 = arith.constant 0 : index
    %193 = vector.load %arg9[%c0_74, %c0_75] : memref<32x256xf32, #tpu.memory_space<vmem>>, vector<32x128xf32>
    %c0_76 = arith.constant 0 : index
    %c128 = arith.constant 128 : index
    %194 = vector.load %arg9[%c0_76, %c128] : memref<32x256xf32, #tpu.memory_space<vmem>>, vector<32x128xf32>
    %cst_77 = arith.constant dense<0.000000e+00> : vector<16x32xf32>
    %195 = tpu.matmul %188, %189, %cst_77 {dimension_numbers = #tpu.dot_dimension_numbers<[1], [0], [0], [1], [0, 0, 1, 1], [], []>} : vector<16x32xf32>, vector<32x32xf32>, vector<16x32xf32> -> vector<16x32xf32>
    %c0_78 = arith.constant 0 : index
    %c0_79 = arith.constant 0 : index
    %196 = vector.load %arg10[%c0_78, %c0_79] : memref<7x128xf32, #tpu.memory_space<vmem>>, vector<1x32xf32>
    %197 = vector.broadcast %196 : vector<1x32xf32> to vector<16x32xf32>
    %198 = arith.addf %195, %197 : vector<16x32xf32>
    %cst_80 = arith.constant 0.000000e+00 : f32
    %199 = vector.broadcast %cst_80 : f32 to vector<16x32xf32>
    %200 = arith.cmpf oge, %198, %199 : vector<16x32xf32>
    %cst_81 = arith.constant 1.000000e-01 : f32
    %201 = vector.broadcast %cst_81 : f32 to vector<16x32xf32>
    %202 = arith.mulf %201, %198 : vector<16x32xf32>
    %203 = arith.select %200, %198, %202 : vector<16x32xi1>, vector<16x32xf32>
    %cst_82 = arith.constant dense<0.000000e+00> : vector<16x32xf32>
    %204 = tpu.matmul %203, %190, %cst_82 {dimension_numbers = #tpu.dot_dimension_numbers<[1], [0], [0], [1], [0, 0, 1, 1], [], []>} : vector<16x32xf32>, vector<32x32xf32>, vector<16x32xf32> -> vector<16x32xf32>
    %c1_83 = arith.constant 1 : index
    %c0_84 = arith.constant 0 : index
    %205 = vector.load %arg10[%c1_83, %c0_84] : memref<7x128xf32, #tpu.memory_space<vmem>>, vector<1x32xf32>
    %206 = vector.broadcast %205 : vector<1x32xf32> to vector<16x32xf32>
    %207 = arith.addf %204, %206 : vector<16x32xf32>
    %cst_85 = arith.constant 0.000000e+00 : f32
    %208 = vector.broadcast %cst_85 : f32 to vector<16x32xf32>
    %209 = arith.cmpf oge, %207, %208 : vector<16x32xf32>
    %cst_86 = arith.constant 5.000000e-02 : f32
    %210 = vector.broadcast %cst_86 : f32 to vector<16x32xf32>
    %211 = arith.mulf %210, %207 : vector<16x32xf32>
    %212 = arith.select %209, %207, %211 : vector<16x32xi1>, vector<16x32xf32>
    %cst_87 = arith.constant dense<0.000000e+00> : vector<16x128xf32>
    %213 = tpu.matmul %212, %193, %cst_87 {dimension_numbers = #tpu.dot_dimension_numbers<[1], [0], [0], [1], [0, 0, 1, 1], [], []>} : vector<16x32xf32>, vector<32x128xf32>, vector<16x128xf32> -> vector<16x128xf32>
    %c2_88 = arith.constant 2 : index
    %c0_89 = arith.constant 0 : index
    %214 = vector.load %arg10[%c2_88, %c0_89] : memref<7x128xf32, #tpu.memory_space<vmem>>, vector<1x128xf32>
    %215 = vector.broadcast %214 : vector<1x128xf32> to vector<16x128xf32>
    %216 = arith.mulf %213, %215 : vector<16x128xf32>
    %c3_90 = arith.constant 3 : index
    %c0_91 = arith.constant 0 : index
    %217 = vector.load %arg10[%c3_90, %c0_91] : memref<7x128xf32, #tpu.memory_space<vmem>>, vector<1x128xf32>
    %218 = vector.broadcast %217 : vector<1x128xf32> to vector<16x128xf32>
    %219 = arith.addf %216, %218 : vector<16x128xf32>
    %c0_92 = arith.constant 0 : index
    %c0_93 = arith.constant 0 : index
    %220 = vector.load %arg3[%c0_92, %c0_93] : memref<16x16xf32, #tpu.memory_space<vmem>>, vector<16x16xf32>
    %cst_94 = arith.constant dense<0.000000e+00> : vector<16x32xf32>
    %221 = tpu.matmul %220, %191, %cst_94 {dimension_numbers = #tpu.dot_dimension_numbers<[1], [0], [0], [1], [0, 0, 1, 1], [], []>} : vector<16x16xf32>, vector<16x32xf32>, vector<16x32xf32> -> vector<16x32xf32>
    %c4_95 = arith.constant 4 : index
    %c0_96 = arith.constant 0 : index
    %222 = vector.load %arg10[%c4_95, %c0_96] : memref<7x128xf32, #tpu.memory_space<vmem>>, vector<1x32xf32>
    %223 = vector.broadcast %222 : vector<1x32xf32> to vector<16x32xf32>
    %224 = arith.addf %221, %223 : vector<16x32xf32>
    %cst_97 = arith.constant 0.000000e+00 : f32
    %225 = vector.broadcast %cst_97 : f32 to vector<16x32xf32>
    %226 = arith.cmpf oge, %224, %225 : vector<16x32xf32>
    %cst_98 = arith.constant 1.200000e-01 : f32
    %227 = vector.broadcast %cst_98 : f32 to vector<16x32xf32>
    %228 = arith.mulf %227, %224 : vector<16x32xf32>
    %229 = arith.select %226, %224, %228 : vector<16x32xi1>, vector<16x32xf32>
    %cst_99 = arith.constant dense<0.000000e+00> : vector<16x32xf32>
    %230 = tpu.matmul %229, %192, %cst_99 {dimension_numbers = #tpu.dot_dimension_numbers<[1], [0], [0], [1], [0, 0, 1, 1], [], []>} : vector<16x32xf32>, vector<32x32xf32>, vector<16x32xf32> -> vector<16x32xf32>
    %c5_100 = arith.constant 5 : index
    %c0_101 = arith.constant 0 : index
    %231 = vector.load %arg10[%c5_100, %c0_101] : memref<7x128xf32, #tpu.memory_space<vmem>>, vector<1x32xf32>
    %232 = vector.broadcast %231 : vector<1x32xf32> to vector<16x32xf32>
    %233 = arith.addf %230, %232 : vector<16x32xf32>
    %cst_102 = arith.constant 0.000000e+00 : f32
    %234 = vector.broadcast %cst_102 : f32 to vector<16x32xf32>
    %235 = arith.cmpf oge, %233, %234 : vector<16x32xf32>
    %cst_103 = arith.constant 1.800000e-01 : f32
    %236 = vector.broadcast %cst_103 : f32 to vector<16x32xf32>
    %237 = arith.mulf %236, %233 : vector<16x32xf32>
    %238 = arith.select %235, %233, %237 : vector<16x32xi1>, vector<16x32xf32>
    %cst_104 = arith.constant dense<0.000000e+00> : vector<16x128xf32>
    %239 = tpu.matmul %238, %194, %cst_104 {dimension_numbers = #tpu.dot_dimension_numbers<[1], [0], [0], [1], [0, 0, 1, 1], [], []>} : vector<16x32xf32>, vector<32x128xf32>, vector<16x128xf32> -> vector<16x128xf32>
    %c6 = arith.constant 6 : index
    %c0_105 = arith.constant 0 : index
    %240 = vector.load %arg10[%c6, %c0_105] : memref<7x128xf32, #tpu.memory_space<vmem>>, vector<1x128xf32>
    %241 = vector.broadcast %240 : vector<1x128xf32> to vector<16x128xf32>
    %242 = arith.addf %239, %241 : vector<16x128xf32>
    %243 = arith.addf %219, %242 : vector<16x128xf32>
    %c0_106 = arith.constant 0 : index
    %c0_107 = arith.constant 0 : index
    %244 = vector.load %arg11[%c0_106, %c0_107] : memref<16x128xf32, #tpu.memory_space<vmem>>, vector<16x128xf32>
    tpu.vector_store %arg11[%c0_106, %c0_107], %243 {strides = array<i32>} : memref<16x128xf32, #tpu.memory_space<vmem>>, vector<16x128xf32>,
    return
  }
  func.func @transform_0(%arg0: i32) -> (i32, i32) {
    %c0_i32 = arith.constant 0 : i32
    %c0_i32_0 = arith.constant 0 : i32
    return %arg0, %c0_i32 : i32, i32
  }
  func.func @transform_1(%arg0: i32) -> (i32, i32) {
    %c0_i32 = arith.constant 0 : i32
    %c0_i32_0 = arith.constant 0 : i32
    return %arg0, %c0_i32 : i32, i32
  }
  func.func @transform_2(%arg0: i32) -> (i32, i32) {
    %c0_i32 = arith.constant 0 : i32
    %c0_i32_0 = arith.constant 0 : i32
    return %arg0, %c0_i32 : i32, i32
  }
  func.func @transform_3(%arg0: i32) -> (i32, i32) {
    %c0_i32 = arith.constant 0 : i32
    %c0_i32_0 = arith.constant 0 : i32
    %c0_i32_1 = arith.constant 0 : i32
    return %c0_i32, %c0_i32_0 : i32, i32
  }
  func.func @transform_4(%arg0: i32) -> (i32, i32) {
    %c0_i32 = arith.constant 0 : i32
    %c0_i32_0 = arith.constant 0 : i32
    %c0_i32_1 = arith.constant 0 : i32
    return %c0_i32, %c0_i32_0 : i32, i32
  }
  func.func @transform_5(%arg0: i32) -> (i32, i32) {
    %c0_i32 = arith.constant 0 : i32
    %c0_i32_0 = arith.constant 0 : i32
    %c0_i32_1 = arith.constant 0 : i32
    return %c0_i32, %c0_i32_0 : i32, i32
  }
  func.func @transform_6(%arg0: i32) -> (i32, i32) {
    %c0_i32 = arith.constant 0 : i32
    %c0_i32_0 = arith.constant 0 : i32
    %c0_i32_1 = arith.constant 0 : i32
    return %c0_i32, %c0_i32_0 : i32, i32
  }
  func.func @transform_7(%arg0: i32) -> (i32, i32) {
    %c0_i32 = arith.constant 0 : i32
    %c0_i32_0 = arith.constant 0 : i32
    %c0_i32_1 = arith.constant 0 : i32
    return %c0_i32, %c0_i32_0 : i32, i32
  }
  func.func @transform_8(%arg0: i32) -> (i32, i32) {
    %c0_i32 = arith.constant 0 : i32
    %c0_i32_0 = arith.constant 0 : i32
    %c0_i32_1 = arith.constant 0 : i32
    return %c0_i32, %c0_i32_0 : i32, i32
  }
  func.func @transform_9(%arg0: i32) -> (i32, i32) {
    %c0_i32 = arith.constant 0 : i32
    %c0_i32_0 = arith.constant 0 : i32
    %c0_i32_1 = arith.constant 0 : i32
    return %c0_i32, %c0_i32_0 : i32, i32
  }
  func.func @transform_10(%arg0: i32) -> (i32, i32) {
    %c0_i32 = arith.constant 0 : i32
    %c0_i32_0 = arith.constant 0 : i32
    return %arg0, %c0_i32 : i32, i32
  }
}

</mosaic_0001>

<bundles_post_ra>
// kernel: global_meta_aggregator.1
= control target key start
LH: loop header
LB: loop body
LE: loop exit
PB: predicated region body
PF: predicated region fallthrough
CT: control target
= control target key end

     0   :  { %vm79_vm0 = vcmask 785408   ;;  %s2615_s0 = inlined_call_operand.vmem [shape: f32[16,96], index: 0, kind: input, shape index: {}]   ;;  %s2616_s1 = inlined_call_operand.vmem [shape: f32[16,32], index: 1, kind: input, shape index: {}]   ;;  %s2617_s2 = inlined_call_operand.vmem [shape: f32[16,16], index: 2, kind: input, shape index: {}]   ;;  %s2618_s3 = inlined_call_operand.vmem [shape: f32[288,96], index: 3, kind: input, shape index: {}]   ;;  %s2619_s4 = inlined_call_operand.vmem [shape: f32[6,96], index: 4, kind: input, shape index: {}]   ;;  %s2620_s5 = inlined_call_operand.vmem [shape: f32[160,64], index: 5, kind: input, shape index: {}]   ;;  %s2621_s6 = inlined_call_operand.vmem [shape: f32[6,64], index: 6, kind: input, shape index: {}]   ;;  %s2622_s7 = inlined_call_operand.vmem [shape: f32[112,32], index: 7, kind: input, shape index: {}]   ;;  %s2623_s8 = inlined_call_operand.vmem [shape: f32[32,256], index: 8, kind: input, shape index: {}]   ;;  %s2624_s9 = inlined_call_operand.vmem [shape: f32[7,128], index: 9, kind: input, shape index: {}]   ;;  %s2625_s10 = inlined_call_operand.hbm [shape: f32[16,128], index: 10, kind: output, shape index: {}]  }
   0x1   :  { %v36_v0 = vld [vmem:[%s2618_s3] sm:$0xff]  ;;  %v37_v1 = vld [vmem:[%s2618_s3 + $0x8] sm:$0xff]  ;;  %v38_v2 = vld [vmem:[%s2618_s3 + $0x10] sm:$0xff] }
   0x2   :  { %v1880_v3 = vpack.c.bf16 %v37_v1, %v36_v0  ;;  %v39_v4 = vld [vmem:[%s2618_s3 + $0x18] sm:$0xff]  ;;  %v40_v6 = vld [vmem:[%s2618_s3 + $0x20] sm:$0xff]  ;;  %v41_v7 = vld [vmem:[%s2618_s3 + $0x28] sm:$0xff] }
   0x3   :  { %v1884_v5 = vpack.c.bf16 %v39_v4, %v38_v2  ;;  %v72_v8 = vld [vmem:[%s2615_s0] sm:$0xff]  ;;  %v1888_v9 = vpack.c.bf16 %v41_v7, %v40_v6  ;;  %v42_v10 = vld [vmem:[%s2618_s3 + $0x30] sm:$0xff]  ;;  %v43_v11 = vld [vmem:[%s2618_s3 + $0x38] sm:$0xff] }
   0x4   :  { %1881 = vmatprep.subr.bf16.mxu0 %v1880_v3  ;;  %1712 = vmatprep.mubr.msk.f32.mxu0 %vm79_vm0, %v72_v8 }
   0x5   :  { %1883 = vmatpush3.bf16.msra.mxu0 %v1880_v3 }
   0x6   :  { %1885 = vmatprep.subr.bf16.mxu0 %v1884_v5 }
   0x7   :  { %15 = vsyncpa [#allocation3], 0  ;;  %v1892_v12 = vpack.c.bf16 %v43_v11, %v42_v10  ;;  %v44_v13 = vld [vmem:[%s2618_s3 + $0x40] sm:$0xff]  ;;  %v45_v14 = vld [vmem:[%s2618_s3 + $0x48] sm:$0xff]  ;;  %vm374_vm1 = vcmask 261120   ;;  %vm458_vm2 = vcmask 523264  }
   0x8   :  { %v1896_v15 = vpack.c.bf16 %v45_v14, %v44_v13  ;;  %v46_v16 = vld [vmem:[%s2618_s3 + $0x50] sm:$0xff]  ;;  %v47_v17 = vld [vmem:[%s2618_s3 + $0x58] sm:$0xff]  ;;  %v347_v19 = vld [vmem:[%s2620_s5] sm:$0xff]  ;;  %vm837_vm11 = vcmask 23552   ;;  %vm844_vm12 = vcmask 15360   ;;  %s2122_s27 = smov 96  }
   0x9   :  { %1887 = vmatpush3.bf16.msra.mxu0 %v1884_v5  ;;  %v1900_v18 = vpack.c.bf16 %v47_v17, %v46_v16  ;;  %v348_v20 = vld [vmem:[%s2620_s5 + $0x8] sm:$0xff]  ;;  %v349_v22 = vld [vmem:[%s2620_s5 + $0x10] sm:$0xff]  ;;  %v350_v23 = vld [vmem:[%s2620_s5 + $0x18] sm:$0xff]  ;;  %vm1253_vm15 = vcmask 130048  }
   0xa   :  { %1889 = vmatprep.subr.bf16.mxu0 %v1888_v9  ;;  %v1928_v21 = vpack.c.bf16 %v348_v20, %v347_v19  ;;  %v73_v24 = vld [vmem:[%s2615_s0 + $0x8] sm:$0xff]  ;;  %v1932_v25 = vpack.c.bf16 %v350_v23, %v349_v22  ;;  %v367_v26 = vld [vmem:[%s2616_s1] sm:$0xff]  ;;  %v50_v53 = vld [vmem:[%s2618_s3 + $0x70] sm:$0xff] }
   0xb   :  { %v368_v27 = vld [vmem:[%s2616_s1 + $0x8] sm:$0xff]  ;;  %v1539_v28 = vld [vmem:[%s2619_s4] ss:$0 sm:$0xff]  ;;  %v51_v54 = vld [vmem:[%s2618_s3 + $0x78] sm:$0xff]  ;;  %s2123_s1 = smov 64  }
   0xc   :  { %v1549_v37 = vld [vmem:[%s2621_s6] ss:$0 sm:$0xff]  ;;  %v49_v51 = vld [vmem:[%s2618_s3 + $0x68] sm:$0xff]  ;;  %v1908_v55 = vpack.c.bf16 %v51_v54, %v50_v53  ;;  %v54_v59 = vld [vmem:[%s2618_s3 + $0x90] sm:$0xff] }
   0xd   :  { %1891 = vmatpush3.bf16.msra.mxu0 %v1888_v9  ;;  %v48_v50 = vld [vmem:[%s2618_s3 + $0x60] sm:$0xff]  ;;  %v53_v57 = vld [vmem:[%s2618_s3 + $0x88] sm:$0xff]  ;;  %v55_v60 = vld [vmem:[%s2618_s3 + $0x98] sm:$0xff] }
   0xe   :  { %1893 = vmatprep.subr.bf16.mxu0 %v1892_v12  ;;  %v1904_v52 = vpack.c.bf16 %v49_v51, %v48_v50  ;;  %v52_v56 = vld [vmem:[%s2618_s3 + $0x80] sm:$0xff]  ;;  %v1916_v61 = vpack.c.bf16 %v55_v60, %v54_v59  ;;  %v57_v63 = vld [vmem:[%s2618_s3 + $0xa8] sm:$0xff]  ;;  %v58_v0 = vld [vmem:[%s2618_s3 + $0xb0] sm:$0xff] }
   0xf   :  { %v1912_v58 = vpack.c.bf16 %v53_v57, %v52_v56  ;;  %v56_v62 = vld [vmem:[%s2618_s3 + $0xa0] sm:$0xff]  ;;  %v59_v2 = vld [vmem:[%s2618_s3 + $0xb8] sm:$0xff]  ;;  %v352_v5 = vld [vmem:[%s2620_s5 + $0x28] sm:$0xff] }
  0x10   :  { %1905 = vmatprep.subr.bf16.mxu1 %v1904_v52  ;;  %v1920_v1 = vpack.c.bf16 %v57_v63, %v56_v62  ;;  %v1924_v3 = vpack.c.bf16 %v59_v2, %v58_v0  ;;  %v351_v4 = vld [vmem:[%s2620_s5 + $0x20] sm:$0xff]  ;;  %v353_v53 = vld [vmem:[%s2620_s5 + $0x30] sm:$0xff]  ;;  %v354_v54 = vld [vmem:[%s2620_s5 + $0x38] sm:$0xff] }
  0x11   :  { %1895 = vmatpush3.bf16.msra.mxu0 %v1892_v12  ;;  %1907 = vmatpush3.bf16.msra.mxu1 %v1904_v52  ;;  %v2322_v6 = vpack.c.bf16 %v352_v5, %v351_v4  ;;  %v1940_v59 = vpack.c.bf16 %v354_v54, %v353_v53  ;;  %v1553_v60 = vld [vmem:[%s2621_s6 + $0x2] ss:$0 sm:$0xff]  ;;  %v357_v5 = vld [vmem:[%s2620_s5 + $0x50] sm:$0xff]  ;;  %v71_v53 = vld [vmem:[%s2618_s3 + $0x118] sm:$0xff] }
  0x12   :  { %1897 = vmatprep.subr.bf16.mxu0 %v1896_v15  ;;  %1909 = vmatprep.subr.bf16.mxu1 %v1908_v55  ;;  %v355_v0 = vld [vmem:[%s2620_s5 + $0x40] sm:$0xff] }
  0x15   :  { %1899 = vmatpush3.bf16.msra.mxu0 %v1896_v15  ;;  %1911 = vmatpush3.bf16.msra.mxu1 %v1908_v55  ;;  %v1552_v55 = vld [vmem:[%s2621_s6 + $0x1] ss:$0 sm:$0xff] }
  0x16   :  { %1901 = vmatprep.subr.bf16.mxu0 %v1900_v18  ;;  %1913 = vmatprep.subr.bf16.mxu1 %v1912_v58 }
  0x19   :  { %1903 = vmatpush3.bf16.msra.mxu0 %v1900_v18  ;;  %1915 = vmatpush3.bf16.msra.mxu1 %v1912_v58 }
  0x1a   :  { %1929 = vmatprep.subr.bf16.mxu0 %v1928_v21  ;;  %1917 = vmatprep.subr.bf16.mxu1 %v1916_v61 }
  0x1c   :  { %1713 = vmatmul.mubr.msk.f32.vlgmr.msra.gmra.mrb[0].mxu0 %vm79_vm0, %v73_v24 }
  0x1d   :  { %1931 = vmatpush3.bf16.msra.mxu0 %v1928_v21  ;;  %1750 = vmatprep.mubr.msk.f32.mxu0 %vm374_vm1, %v367_v26 }
  0x1e   :  { %1933 = vmatprep.subr.bf16.mxu0 %v1932_v25  ;;  %1919 = vmatpush3.bf16.msra.mxu1 %v1916_v61 }
  0x1f   :  { %1921 = vmatprep.subr.bf16.mxu1 %v1920_v1 }
  0x21   :  { %1935 = vmatpush3.bf16.msra.mxu0 %v1932_v25 }
  0x22   :  { %1923 = vmatpush3.bf16.msra.mxu1 %v1920_v1 }
  0x23   :  { %1925 = vmatprep.subr.bf16.mxu1 %v1924_v3 }
  0x24   :  { %1751 = vmatmul.mubr.msk.f32.vlgmr.msra.gmra.mrb[2].mxu0 %vm374_vm1, %v368_v27 }
  0x26   :  { %1927 = vmatpush3.bf16.msra.mxu1 %v1924_v3 }
  0x27   :  { %1937 = vmatprep.subr.bf16.mxu1 %v2322_v6 }
  0xef   :  { %v1714_v29 = vpop.f32.mrb[0].mxu0 }
  0xf0   :  { %v152_v30 = vpop.f32.mrb[1].mxu0  ;;  %v2249_v31 = vadd.f32 %v1714_v29, %v1539_v28 }
  0xf1   :  { %v2251_v32 = vadd.f32 %v1539_v28, %v152_v30 }
  0xf2   :  { %v170_v36 = vmul.f32 %v2249_v31, %v2249_v31  ;;  %v166_v39 = vsel %vm79_vm0, %v2249_v31, 0.0 }
  0xf3   :  { %v163_v33 = vsel %vm79_vm0, %v2251_v32, 0.0  ;;  %v169_v34 = vmul.f32 %v2251_v32, %v2251_v32 }
  0xf4   :  { %164 = vadd.xlane.f32.xlu0 %v163_v33  ;;  %v174_v43 = vsel %vm79_vm0, %v170_v36, 0.0 }
  0xf5   :  { %v171_v35 = vsel %vm79_vm0, %v169_v34, 0.0 }
  0xf6   :  { %172 = vadd.xlane.f32.xlu1 %v171_v35 }
  0xf7   :  { %v1752_v38 = vpop.f32.mrb[2].mxu0 }
  0xf8   :  { %v2265_v40 = vadd.f32 %v1752_v38, %v1549_v37  ;;  %v447_v41 = vpop.f32.mrb[3].mxu0  ;;  %167 = vadd.xlane.f32.xlu0 %v166_v39  ;;  %v1542_v39 = vld [vmem:[%s2619_s4 + $0x1] ss:$0 sm:$0xff] }
  0xf9   :  { %v2267_v42 = vadd.f32 %v1549_v37, %v447_v41 }
  0xfa   :  { %175 = vadd.xlane.f32.xlu1 %v174_v43  ;;  %v462_v45 = vsel %vm458_vm2, %v2265_v40, 0.0  ;;  %v466_v47 = vmul.f32 %v2265_v40, %v2265_v40  ;;  %v1543_v43 = vld [vmem:[%s2619_s4 + $0x2] ss:$0 sm:$0xff] }
  0xfb   :  { %v459_v44 = vsel %vm458_vm2, %v2267_v42, 0.0  ;;  %v465_v46 = vmul.f32 %v2267_v42, %v2267_v42 }
  0xfc   :  { %460 = vadd.xlane.f32.xlu0 %v459_v44  ;;  %v470_v49 = vsel %vm458_vm2, %v466_v47, 0.0 }
  0xfd   :  { %v467_v48 = vsel %vm458_vm2, %v465_v46, 0.0 }
  0xfe   :  { %463 = vadd.xlane.f32.xlu1 %v462_v45 }
 0x100   :  { %468 = vadd.xlane.f32.xlu0 %v467_v48 }
 0x102   :  { %471 = vadd.xlane.f32.xlu1 %v470_v49 }
 0x181   :  { %v165_v7 = vpop.xlane.xlu0 %164 }
 0x182   :  { %v177_v8 = vmul.f32 0.010416667, %v165_v7  ;;  %v358_v7 = vld [vmem:[%s2620_s5 + $0x58] sm:$0xff] }
 0x183   :  { %v173_v9 = vpop.xlane.xlu1 %172 }
 0x184   :  { %v181_v10 = vmul.f32 %v177_v8, %v177_v8  ;;  %v179_v11 = vmul.f32 0.010416667, %v173_v9  ;;  %v189_v36 = vsub.f32 %v2251_v32, %v177_v8 }
 0x185   :  { %v168_v12 = vpop.xlane.xlu0 %167 }
 0x186   :  { %v183_v13 = vsub.f32 %v179_v11, %v181_v10  ;;  %v178_v14 = vmul.f32 0.010416667, %v168_v12  ;;  %v1544_v12 = vld [vmem:[%s2619_s4 + $0x3] ss:$0 sm:$0xff] }
 0x187   :  { %v176_v15 = vpop.xlane.xlu1 %175 }
 0x188   :  { %v185_v16 = vadd.f32 1e-05, %v183_v13  ;;  %v182_v17 = vmul.f32 %v178_v14, %v178_v14  ;;  %v180_v18 = vmul.f32 0.010416667, %v176_v15  ;;  %v190_v44 = vsub.f32 %v2249_v31, %v178_v14 }
 0x189   :  { %v461_v19 = vpop.xlane.xlu0 %460 }
 0x18a   :  { %2051 = vrsqrt.f32 %v185_v16  ;;  %v184_v20 = vsub.f32 %v180_v18, %v182_v17  ;;  %v473_v21 = vmul.f32 0.015625, %v461_v19 }
 0x18b   :  { %v464_v22 = vpop.xlane.xlu1 %463 }
 0x18c   :  { %v186_v23 = vadd.f32 1e-05, %v184_v20  ;;  %v477_v24 = vmul.f32 %v473_v21, %v473_v21  ;;  %v474_v25 = vmul.f32 0.015625, %v464_v22  ;;  %v485_v50 = vsub.f32 %v2267_v42, %v473_v21  ;;  %v1554_v22 = vld [vmem:[%s2621_s6 + $0x3] ss:$0 sm:$0xff] }
 0x18d   :  { %v469_v26 = vpop.xlane.xlu0 %468 }
 0x18e   :  { %2053 = vrsqrt.f32 %v186_v23  ;;  %v478_v27 = vmul.f32 %v474_v25, %v474_v25  ;;  %v475_v28 = vmul.f32 0.015625, %v469_v26  ;;  %v486_v56 = vsub.f32 %v2265_v40, %v474_v25  ;;  %v356_v40 = vld [vmem:[%s2620_s5 + $0x48] sm:$0xff] }
 0x18f   :  { %v472_v29 = vpop.xlane.xlu1 %471  ;;  %v1944_v2 = vpack.c.bf16 %v356_v40, %v355_v0 }
 0x190   :  { %v479_v30 = vsub.f32 %v475_v28, %v477_v24  ;;  %v476_v33 = vmul.f32 0.015625, %v472_v29 }
 0x192   :  { %v481_v34 = vadd.f32 1e-05, %v479_v30  ;;  %v480_v35 = vsub.f32 %v476_v33, %v478_v27 }
 0x194   :  { %v2052_v37 = vpop.eup %2051  ;;  %2055 = vrsqrt.f32 %v481_v34  ;;  %v482_v38 = vadd.f32 1e-05, %v480_v35  ;;  %v60_v35 = vld [vmem:[%s2618_s3 + $0xc0] sm:$0xff] }
 0x195   :  { %v191_v41 = vmul.f32 %v2052_v37, %v189_v36  ;;  %v61_v36 = vld [vmem:[%s2618_s3 + $0xc8] sm:$0xff] }
 0x196   :  { %2057 = vrsqrt.f32 %v482_v38  ;;  %v1952_v38 = vpack.c.bf16 %v61_v36, %v60_v35 }
 0x197   :  { %v197_v45 = vmul.f32 %v1542_v39, %v191_v41  ;;  %v63_v41 = vld [vmem:[%s2618_s3 + $0xd8] sm:$0xff] }
 0x198   :  { %v2054_v46 = vpop.eup %2053  ;;  %1953 = vmatprep.subr.bf16.mxu0 %v1952_v38 }
 0x199   :  { %v192_v47 = vmul.f32 %v2054_v46, %v190_v44  ;;  %v203_v48 = vadd.f32 %v1543_v43, %v197_v45  ;;  %1955 = vmatpush3.bf16.msra.mxu0 %v1952_v38  ;;  %v64_v44 = vld [vmem:[%s2618_s3 + $0xe0] sm:$0xff]  ;;  %v65_v45 = vld [vmem:[%s2618_s3 + $0xe8] sm:$0xff] }
 0x19a   :  { %v1960_v46 = vpack.c.bf16 %v65_v45, %v64_v44 }
 0x19b   :  { %v198_v32 = vmul.f32 %v1542_v39, %v192_v47  ;;  %vm205_vm3 = vcmp.ge.f32.partialorder %v203_v48, 0.0  ;;  %v207_v49 = vmul.f32 0.25, %v203_v48  ;;  %v62_v39 = vld [vmem:[%s2618_s3 + $0xd0] sm:$0xff] }
 0x19c   :  { %v66_v47 = vld [vmem:[%s2618_s3 + $0xf0] sm:$0xff] }
 0x19d   :  { %v204_v51 = vadd.f32 %v1543_v43, %v198_v32  ;;  %v209_v52 = vsel %vm205_vm3, %v203_v48, %v207_v49  ;;  %v1956_v43 = vpack.c.bf16 %v63_v41, %v62_v39  ;;  %v67_v48 = vld [vmem:[%s2618_s3 + $0xf8] sm:$0xff]  ;;  %v68_v49 = vld [vmem:[%s2618_s3 + $0x100] sm:$0xff] }
 0x19e   :  { %v2056_v31 = vpop.eup %2055  ;;  %1739 = vmatprep.mubr.msk.f32.mxu1 %vm79_vm0, %v209_v52  ;;  %v1964_v32 = vpack.c.bf16 %v67_v48, %v66_v47  ;;  %v70_v52 = vld [vmem:[%s2618_s3 + $0x110] sm:$0xff] }
 0x19f   :  { %vm206_vm4 = vcmp.ge.f32.partialorder %v204_v51, 0.0  ;;  %v208_v42 = vmul.f32 0.25, %v204_v51  ;;  %v487_v57 = vmul.f32 %v2056_v31, %v485_v50  ;;  %1957 = vmatprep.subr.bf16.mxu0 %v1956_v43  ;;  %v69_v50 = vld [vmem:[%s2618_s3 + $0x108] sm:$0xff]  ;;  %v1972_v54 = vpack.c.bf16 %v71_v53, %v70_v52  ;;  %v359_v31 = vld [vmem:[%s2620_s5 + $0x60] sm:$0xff]  ;;  %s2124_s3 = smov [#allocation2]  }
 0x1a0   :  { %v2058_v58 = vpop.eup %2057  ;;  %1959 = vmatpush3.bf16.msra.mxu0 %v1956_v43  ;;  %v1558_v53 = vld [vmem:[%s2621_s6 + $0x5] ss:$0 sm:$0xff] }
 0x1a1   :  { %v210_v61 = vsel %vm206_vm4, %v204_v51, %v208_v42  ;;  %v488_v62 = vmul.f32 %v2058_v58, %v486_v56  ;;  %v493_v63 = vmul.f32 %v1552_v55, %v487_v57  ;;  %1961 = vmatprep.subr.bf16.mxu0 %v1960_v46  ;;  %v1968_v51 = vpack.c.bf16 %v69_v50, %v68_v49  ;;  %v361_v42 = vld [vmem:[%s2620_s5 + $0x70] sm:$0xff]  ;;  %v362_v57 = vld [vmem:[%s2620_s5 + $0x78] sm:$0xff]  ;;  %v363_v58 = vld [vmem:[%s2620_s5 + $0x80] sm:$0xff] }
 0x1a2   :  { %1740 = vmatmul.mubr.msk.f32.vlgmr.msra.gmra.mrb[0].mxu1 %vm79_vm0, %v210_v61 }
 0x1a3   :  { %1939 = vmatpush3.bf16.msra.mxu1 %v2322_v6  ;;  %v499_v1 = vadd.f32 %v1553_v60, %v493_v63  ;;  %v494_v3 = vmul.f32 %v1552_v55, %v488_v62  ;;  %v1948_v6 = vpack.c.bf16 %v358_v7, %v357_v5  ;;  %v360_v55 = vld [vmem:[%s2620_s5 + $0x68] sm:$0xff]  ;;  %v365_v62 = vld [vmem:[%s2620_s5 + $0x90] sm:$0xff]  ;;  %v366_v63 = vld [vmem:[%s2620_s5 + $0x98] sm:$0xff] }
 0x1a4   :  { %1941 = vmatprep.subr.bf16.mxu1 %v1940_v59  ;;  %1963 = vmatpush3.bf16.msra.mxu0 %v1960_v46  ;;  %v1976_v56 = vpack.c.bf16 %v360_v55, %v359_v31  ;;  %v1988_v0 = vpack.c.bf16 %v366_v63, %v365_v62 }
 0x1a5   :  { %vm501_vm5 = vcmp.ge.f32.partialorder %v499_v1, 0.0  ;;  %v503_v4 = vmul.f32 0.15, %v499_v1  ;;  %v500_v9 = vadd.f32 %v1553_v60, %v494_v3  ;;  %1965 = vmatprep.subr.bf16.mxu0 %v1964_v32  ;;  %v364_v60 = vld [vmem:[%s2620_s5 + $0x88] sm:$0xff] }
 0x1a6   :  { %v1984_v61 = vpack.c.bf16 %v364_v60, %v363_v58 }
 0x1a7   :  { %1943 = vmatpush3.bf16.msra.mxu1 %v1940_v59  ;;  %v505_v8 = vsel %vm501_vm5, %v499_v1, %v503_v4  ;;  %v504_v10 = vmul.f32 0.15, %v500_v9  ;;  %vm502_vm6 = vcmp.ge.f32.partialorder %v500_v9, 0.0  ;;  %v1980_v59 = vpack.c.bf16 %v362_v57, %v361_v42 }
 0x1a8   :  { %1769 = vmatprep.mubr.msk.f32.mxu1 %vm458_vm2, %v505_v8  ;;  %1945 = vmatprep.subr.bf16.mxu1 %v1944_v2 }
 0x1a9   :  { %v506_v11 = vsel %vm502_vm6, %v500_v9, %v504_v10  ;;  %1967 = vmatpush3.bf16.msra.mxu0 %v1964_v32 }
 0x1aa   :  { %1969 = vmatprep.subr.bf16.mxu0 %v1968_v51 }
 0x1ab   :  { %1947 = vmatpush3.bf16.msra.mxu1 %v1944_v2 }
 0x1ac   :  { %1949 = vmatprep.subr.bf16.mxu1 %v1948_v6 }
 0x1ad   :  { %1971 = vmatpush3.bf16.msra.mxu0 %v1968_v51  ;;  %v1557_v51 = vld [vmem:[%s2621_s6 + $0x4] ss:$0 sm:$0xff] }
 0x1ae   :  { %1973 = vmatprep.subr.bf16.mxu0 %v1972_v54 }
 0x1af   :  { %1951 = vmatpush3.bf16.msra.mxu1 %v1948_v6 }
 0x1b0   :  { %1977 = vmatprep.subr.bf16.mxu1 %v1976_v56 }
 0x1b1   :  { %1975 = vmatpush3.bf16.msra.mxu0 %v1972_v54 }
 0x1b2   :  { %1770 = vmatmul.mubr.msk.f32.vlgmr.msra.gmra.mrb[2].mxu1 %vm458_vm2, %v506_v11 }
 0x1b3   :  { %1979 = vmatpush3.bf16.msra.mxu1 %v1976_v56 }
 0x1b4   :  { %1981 = vmatprep.subr.bf16.mxu1 %v1980_v59 }
 0x1b7   :  { %1983 = vmatpush3.bf16.msra.mxu1 %v1980_v59 }
 0x1b8   :  { %1985 = vmatprep.subr.bf16.mxu1 %v1984_v61 }
 0x1bb   :  { %1987 = vmatpush3.bf16.msra.mxu1 %v1984_v61 }
 0x1bc   :  { %1989 = vmatprep.subr.bf16.mxu1 %v1988_v0 }
 0x1bf   :  { %1991 = vmatpush3.bf16.msra.mxu1 %v1988_v0 }
 0x275   :  { %v1741_v13 = vpop.f32.mrb[0].mxu1 }
 0x276   :  { %v2367_v14 = vadd.f32 %v1741_v13, %v1544_v12  ;;  %v288_v15 = vpop.f32.mrb[1].mxu1 }
 0x277   :  { %v2369_v16 = vadd.f32 %v1544_v12, %v288_v15 }
 0x278   :  { %v302_v17 = vsel %vm79_vm0, %v2367_v14, 0.0  ;;  %v306_v21 = vmul.f32 %v2367_v14, %v2367_v14 }
 0x279   :  { %303 = vadd.xlane.f32.xlu0 %v302_v17  ;;  %v299_v18 = vsel %vm79_vm0, %v2369_v16, 0.0  ;;  %v305_v19 = vmul.f32 %v2369_v16, %v2369_v16 }
 0x27a   :  { %v310_v23 = vsel %vm79_vm0, %v306_v21, 0.0 }
 0x27b   :  { %v307_v20 = vsel %vm79_vm0, %v305_v19, 0.0 }
 0x27d   :  { %300 = vadd.xlane.f32.xlu0 %v299_v18 }
 0x281   :  { %308 = vadd.xlane.f32.xlu0 %v307_v20 }
 0x285   :  { %v1771_v24 = vpop.f32.mrb[2].mxu1  ;;  %311 = vadd.xlane.f32.xlu0 %v310_v23 }
 0x286   :  { %v2384_v25 = vadd.f32 %v1771_v24, %v1554_v22  ;;  %v584_v26 = vpop.f32.mrb[3].mxu1 }
 0x287   :  { %v2386_v27 = vadd.f32 %v1554_v22, %v584_v26  ;;  %v1547_v26 = vld [vmem:[%s2619_s4 + $0x4] ss:$0 sm:$0xff] }
 0x288   :  { %v598_v28 = vsel %vm458_vm2, %v2384_v25, 0.0  ;;  %v602_v34 = vmul.f32 %v2384_v25, %v2384_v25 }
 0x289   :  { %599 = vadd.xlane.f32.xlu1 %v598_v28  ;;  %v595_v29 = vsel %vm458_vm2, %v2386_v27, 0.0  ;;  %v601_v30 = vmul.f32 %v2386_v27, %v2386_v27 }
 0x28a   :  { %v606_v37 = vsel %vm458_vm2, %v602_v34, 0.0 }
 0x28b   :  { %v603_v33 = vsel %vm458_vm2, %v601_v30, 0.0  ;;  %v1548_v30 = vld [vmem:[%s2619_s4 + $0x5] ss:$0 sm:$0xff] }
 0x28d   :  { %596 = vadd.xlane.f32.xlu1 %v595_v29 }
 0x291   :  { %604 = vadd.xlane.f32.xlu1 %v603_v33 }
 0x295   :  { %607 = vadd.xlane.f32.xlu1 %v606_v37 }
 0x306   :  { %v304_v40 = vpop.xlane.xlu0 %303 }
 0x307   :  { %v314_v4 = vmul.f32 0.010416667, %v304_v40 }
 0x309   :  { %v318_v9 = vmul.f32 %v314_v4, %v314_v4  ;;  %v326_v33 = vsub.f32 %v2367_v14, %v314_v4 }
 0x30a   :  { %v301_v1 = vpop.xlane.xlu0 %300 }
 0x30b   :  { %v313_v2 = vmul.f32 0.010416667, %v301_v1 }
 0x30d   :  { %v317_v5 = vmul.f32 %v313_v2, %v313_v2  ;;  %v325_v19 = vsub.f32 %v2369_v16, %v313_v2 }
 0x30e   :  { %v309_v3 = vpop.xlane.xlu0 %308 }
 0x30f   :  { %v315_v7 = vmul.f32 0.010416667, %v309_v3 }
 0x311   :  { %v319_v8 = vsub.f32 %v315_v7, %v317_v5 }
 0x312   :  { %v312_v6 = vpop.xlane.xlu0 %311 }
 0x313   :  { %v321_v10 = vadd.f32 1e-05, %v319_v8  ;;  %v316_v11 = vmul.f32 0.010416667, %v312_v6 }
 0x315   :  { %2059 = vrsqrt.f32 %v321_v10  ;;  %v320_v12 = vsub.f32 %v316_v11, %v318_v9 }
 0x316   :  { %v600_v13 = vpop.xlane.xlu1 %599 }
 0x317   :  { %v322_v15 = vadd.f32 1e-05, %v320_v12  ;;  %v610_v22 = vmul.f32 0.015625, %v600_v13 }
 0x319   :  { %2061 = vrsqrt.f32 %v322_v15  ;;  %v614_v36 = vmul.f32 %v610_v22, %v610_v22  ;;  %v622_v54 = vsub.f32 %v2384_v25, %v610_v22 }
 0x31a   :  { %v597_v17 = vpop.xlane.xlu1 %596 }
 0x31b   :  { %v609_v18 = vmul.f32 0.015625, %v597_v17 }
 0x31d   :  { %v613_v23 = vmul.f32 %v609_v18, %v609_v18  ;;  %v621_v49 = vsub.f32 %v2386_v27, %v609_v18 }
 0x31e   :  { %v605_v20 = vpop.xlane.xlu1 %604 }
 0x31f   :  { %v2060_v21 = vpop.eup %2059  ;;  %v611_v24 = vmul.f32 0.015625, %v605_v20 }
 0x320   :  { %v327_v28 = vmul.f32 %v2060_v21, %v325_v19 }
 0x321   :  { %v615_v29 = vsub.f32 %v611_v24, %v613_v23 }
 0x322   :  { %v608_v34 = vpop.xlane.xlu1 %607  ;;  %v333_v35 = vmul.f32 %v1547_v26, %v327_v28 }
 0x323   :  { %v2062_v16 = vpop.eup %2061  ;;  %v617_v37 = vadd.f32 1e-05, %v615_v29  ;;  %v612_v38 = vmul.f32 0.015625, %v608_v34  ;;  %v2119_v34 = vmov 1  }
 0x324   :  { %v328_v39 = vmul.f32 %v2062_v16, %v326_v33  ;;  %v339_v41 = vadd.f32 %v1548_v30, %v333_v35  ;;  %2044 = vset.pattern.permute.xlu0 %v2119_v34  ;;  %2045 = vset.pattern.permute.xlu1 %v2119_v34 }
 0x325   :  { %2063 = vrsqrt.f32 %v617_v37  ;;  %v616_v43 = vsub.f32 %v612_v38, %v614_v36 }
 0x326   :  { %v334_v44 = vmul.f32 %v1547_v26, %v328_v39  ;;  %vm341_vm7 = vcmp.ge.f32.partialorder %v339_v41, 0.0  ;;  %v343_v45 = vmul.f32 0.2, %v339_v41 }
 0x327   :  { %v618_v46 = vadd.f32 1e-05, %v616_v43 }
 0x328   :  { %v340_v47 = vadd.f32 %v1548_v30, %v334_v44  ;;  %v2466_v48 = vsel %vm341_vm7, %v339_v41, %v343_v45 }
 0x329   :  { %2065 = vrsqrt.f32 %v618_v46  ;;  %1796 = vmatprep.mubr.msk.f32.mxu0 %vm79_vm0, %v2466_v48 }
 0x32a   :  { %vm342_vm8 = vcmp.ge.f32.partialorder %v340_v47, 0.0  ;;  %v344_v14 = vmul.f32 0.2, %v340_v47 }
 0x32c   :  { %v2470_v32 = vsel %vm342_vm8, %v340_v47, %v344_v14  ;;  %v2120_v47 = vmov 0   ;;  %v2121_v14 = vmov 2  }
 0x32d   :  { %1797 = vmatmul.mubr.msk.f32.vlgmr.msra.gmra.mrb[4].mxu0 %vm79_vm0, %v2470_v32 }
 0x32f   :  { %v2064_v50 = vpop.eup %2063 }
 0x330   :  { %v623_v52 = vmul.f32 %v2064_v50, %v621_v49  ;;  %v945_v50 = vld [vmem:[%s2622_s7] sm:$0xff] }
 0x332   :  { %v629_v31 = vmul.f32 %v1557_v51, %v623_v52 }
 0x333   :  { %v2066_v55 = vpop.eup %2065 }
 0x334   :  { %v624_v56 = vmul.f32 %v2066_v55, %v622_v54  ;;  %v635_v42 = vadd.f32 %v1558_v53, %v629_v31  ;;  %v947_v55 = vld [vmem:[%s2622_s7 + $0x10] sm:$0xff] }
 0x336   :  { %v630_v57 = vmul.f32 %v1557_v51, %v624_v56  ;;  %vm637_vm9 = vcmp.ge.f32.partialorder %v635_v42, 0.0  ;;  %v639_v58 = vmul.f32 0.3, %v635_v42  ;;  %v946_v51 = vld [vmem:[%s2622_s7 + $0x8] sm:$0xff]  ;;  %v948_v56 = vld [vmem:[%s2622_s7 + $0x18] sm:$0xff] }
 0x338   :  { %v636_v27 = vadd.f32 %v1558_v53, %v630_v57  ;;  %v2482_v59 = vsel %vm637_vm9, %v635_v42, %v639_v58  ;;  %v1992_v53 = vpack.c.bf16 %v946_v51, %v945_v50  ;;  %v1996_v42 = vpack.c.bf16 %v948_v56, %v947_v55  ;;  %v962_v50 = vld [vmem:[%s2623_s8 + $0x30] sm:$0xff]  ;;  %v958_v55 = vld [vmem:[%s2622_s7 + $0x68] sm:$0xff] }
 0x339   :  { %1815 = vmatprep.mubr.msk.f32.mxu1 %vm458_vm2, %v2482_v59  ;;  %v955_v51 = vld [vmem:[%s2622_s7 + $0x50] sm:$0xff] }
 0x33a   :  { %vm638_vm10 = vcmp.ge.f32.partialorder %v636_v27, 0.0  ;;  %v640_v60 = vmul.f32 0.3, %v636_v27  ;;  %1993 = vmatprep.subr.bf16.mxu0 %v1992_v53 }
 0x33b   :  { %1995 = vmatpush3.bf16.msra.mxu0 %v1992_v53  ;;  %v956_v53 = vld [vmem:[%s2622_s7 + $0x58] sm:$0xff] }
 0x33c   :  { %v2486_v61 = vsel %vm638_vm10, %v636_v27, %v640_v60  ;;  %1997 = vmatprep.subr.bf16.mxu0 %v1996_v42 }
 0x33d   :  { %1816 = vmatmul.mubr.msk.f32.vlgmr.msra.gmra.mrb[4].mxu1 %vm458_vm2, %v2486_v61 }
 0x33f   :  { %1999 = vmatpush3.bf16.msra.mxu0 %v1996_v42  ;;  %v1570_v42 = vld [vmem:[%s2624_s9 + $0x1] ss:$0 sm:$0xff] }
 0x400   :  { %v1798_v25 = vpop.f32.mrb[4].mxu0 }
 0x401   :  { %v1564_v62 = vmul.f32 -1.442695, %v1798_v25  ;;  %v715_v63 = vpop.f32.mrb[5].mxu0 }
 0x402   :  { %v1563_v0 = vmul.f32 -1.442695, %v715_v63  ;;  %v950_v63 = vld [vmem:[%s2622_s7 + $0x28] sm:$0xff] }
 0x403   :  { %2067 = vpow2.f32 %v1564_v62  ;;  %v949_v62 = vld [vmem:[%s2622_s7 + $0x20] sm:$0xff] }
 0x404   :  { %2069 = vpow2.f32 %v1563_v0  ;;  %v2000_v0 = vpack.c.bf16 %v950_v63, %v949_v62 }
 0x406   :  { %2001 = vmatprep.subr.bf16.mxu1 %v2000_v0 }
 0x407   :  { %2003 = vmatpush3.bf16.msra.mxu1 %v2000_v0 }
 0x40d   :  { %v2068_v40 = vpop.eup %2067 }
 0x40e   :  { %v2070_v1 = vpop.eup %2069  ;;  %v812_v2 = vadd.f32 1.0, %v2068_v40 }
 0x40f   :  { %v811_v3 = vadd.f32 1.0, %v2070_v1 }
 0x410   :  { %2071 = vrcp.f32 %v812_v2  ;;  %v1817_v4 = vpop.f32.mrb[4].mxu1 }
 0x411   :  { %2073 = vrcp.f32 %v811_v3  ;;  %v1566_v5 = vmul.f32 -1.442695, %v1817_v4  ;;  %v796_v7 = vpop.f32.mrb[5].mxu1 }
 0x412   :  { %v1565_v8 = vmul.f32 -1.442695, %v796_v7 }
 0x413   :  { %2075 = vpow2.f32 %v1566_v5 }
 0x414   :  { %2077 = vpow2.f32 %v1565_v8 }
 0x41a   :  { %v2072_v6 = vpop.eup %2071 }
 0x41b   :  { %v2074_v9 = vpop.eup %2073  ;;  %v819_v10 = vmul.f32 1.442695, %v2072_v6 }
 0x41c   :  { %v817_v11 = vmul.f32 1.442695, %v2074_v9 }
 0x41d   :  { %v2076_v12 = vpop.eup %2075 }
 0x41e   :  { %v2078_v13 = vpop.eup %2077  ;;  %2079 = vpow2.f32 %v817_v11  ;;  %v828_v15 = vadd.f32 1.0, %v2076_v12 }
 0x41f   :  { %2081 = vpow2.f32 %v819_v10  ;;  %v827_v17 = vadd.f32 1.0, %v2078_v13 }
 0x420   :  { %2083 = vrcp.f32 %v828_v15 }
 0x421   :  { %2085 = vrcp.f32 %v827_v17 }
 0x428   :  { %v2080_v18 = vpop.eup %2079 }
 0x429   :  { %v2082_v19 = vpop.eup %2081  ;;  %v838_v20 = vsel %vm837_vm11, %v2080_v18, 0.0 }
 0x42a   :  { %v2084_v21 = vpop.eup %2083  ;;  %839 = vadd.xlane.f32.xlu0 %v838_v20  ;;  %v841_v26 = vsel %vm837_vm11, %v2082_v19, 0.0 }
 0x42b   :  { %v2086_v22 = vpop.eup %2085  ;;  %v835_v23 = vmul.f32 1.442695, %v2084_v21 }
 0x42c   :  { %v833_v24 = vmul.f32 1.442695, %v2086_v22 }
 0x42e   :  { %2087 = vpow2.f32 %v833_v24  ;;  %842 = vadd.xlane.f32.xlu0 %v841_v26 }
 0x42f   :  { %2089 = vpow2.f32 %v835_v23 }
 0x438   :  { %v2088_v28 = vpop.eup %2087 }
 0x439   :  { %v845_v29 = vsel %vm844_vm12, %v2088_v28, 0.0  ;;  %v2090_v30 = vpop.eup %2089 }
 0x43a   :  { %846 = vadd.xlane.f32.xlu1 %v845_v29  ;;  %v848_v33 = vsel %vm844_vm12, %v2090_v30, 0.0 }
 0x43e   :  { %849 = vadd.xlane.f32.xlu1 %v848_v33 }
 0x4b7   :  { %v840_v35 = vpop.xlane.xlu0 %839 }
 0x4bb   :  { %v843_v37 = vpop.xlane.xlu0 %842 }
 0x4c7   :  { %v847_v16 = vpop.xlane.xlu1 %846 }
 0x4c8   :  { %v851_v36 = vadd.f32 %v847_v16, %v840_v35 }
 0x4ca   :  { %2091 = vrcp.f32 %v851_v36 }
 0x4cb   :  { %v850_v38 = vpop.xlane.xlu1 %849 }
 0x4cc   :  { %v852_v39 = vadd.f32 %v850_v38, %v843_v37 }
 0x4ce   :  { %2093 = vrcp.f32 %v852_v39 }
 0x4d4   :  { %v2092_v41 = vpop.eup %2091 }
 0x4d5   :  { %v854_v43 = vmul.f32 %v2092_v41, %v2080_v18  ;;  %v857_v49 = vmul.f32 %v2092_v41, %v2088_v28 }
 0x4d7   :  { %872 = vperm.xlu0 %2044, %v854_v43  }
 0x4d8   :  { %v2094_v44 = vpop.eup %2093 }
 0x4d9   :  { %v856_v45 = vmul.f32 %v2094_v44, %v2082_v19  ;;  %v858_v46 = vmul.f32 %v2094_v44, %v2090_v30  ;;  %v954_v30 = vld [vmem:[%s2622_s7 + $0x48] sm:$0xff] }
 0x4db   :  { %2049 = vset.pattern.permute.xlu0 %v2120_v47  ;;  %876 = vperm.xlu1 %2045, %v856_v45  }
 0x4dc   :  { %918 = vperm.xlu0 %2049, %v858_v46  }
 0x4df   :  { %2046 = vset.pattern.permute.xlu1 %v2121_v14 }
 0x4e0   :  { %896 = vperm.xlu1 %2046, %v856_v45   ;;  %2050 = vset.pattern.permute.xlu0 %v2119_v34 }
 0x4e4   :  { %892 = vperm.xlu1 %2046, %v854_v43  }
 0x4e8   :  { %2047 = vset.pattern.permute.xlu1 %v2119_v34  ;;  %v1567_v34 = vld [vmem:[%s2624_s9] ss:$0 sm:$0xff] }
 0x4e9   :  { %926 = vperm.xlu1 %2047, %v857_v49  }
 0x4ed   :  { %930 = vperm.xlu1 %2047, %v858_v46   ;;  %v959_v46 = vld [vmem:[%s2623_s8] sm:$0xff] }
 0x4f1   :  { %2048 = vset.pattern.permute.xlu1 %v2120_v47  ;;  %v960_v47 = vld [vmem:[%s2623_s8 + $0x10] sm:$0xff] }
 0x4f2   :  { %866 = vperm.xlu1 %2048, %v856_v45   ;;  %v1247_v45 = vld [vmem:[%s2617_s2 + $0x8] sm:$0xff]  ;;  %v2008_v14 = vpack.c.bf16 %v960_v47, %v959_v46 }
 0x4f4   :  { %2009 = vmatprep.subr.bf16.mxu0 %v2008_v14 }
 0x4f6   :  { %861 = vperm.xlu1 %2048, %v854_v43   ;;  %v1246_v43 = vld [vmem:[%s2617_s2] sm:$0xff]  ;;  %s1528_s2 = sshll.u32 %s2124_s3, 4  ;;  %s1529_s2 = int_to_ptr.vmem [resolvable:$true] %s1528_s2 }
 0x4f7   :  { %s2095_s12 = scalar_lea.vmem %s1529_s2, 256  ;;  %p2100_p1 = scmp.lt.s32.totalorder %s1529_s2, %s1529_s2 }
 0x4f8   :  { %p2096_p0 = scmp.ne.s32.totalorder %s1529_s2, %s2095_s12  ;;  %p2101_p2 = scmp.lt.s32.totalorder %s2095_s12, %s2095_s12 }
 0x4fa   :  { %913 = vperm.xlu1 %2048, %v857_v49   ;;  %v961_v49 = vld [vmem:[%s2623_s8 + $0x20] sm:$0xff]  ;;  %p2102_p3 = por %p2101_p2, %p2100_p1 }
 0x4fc   :  { %p2103_p4 = pnand %p2102_p3, %p2096_p0 }
 0x556   :  { %v873_v31 = vpop.permute.xlu0 %872 }
 0x557   :  { %v879_v57 = vmul.f32 %v873_v31, %v2466_v48  ;;  %v957_v31 = vld [vmem:[%s2622_s7 + $0x60] sm:$0xff] }
 0x558   :  { %v2024_v56 = vpack.c.bf16 %v958_v55, %v957_v31 }
 0x55a   :  { %v877_v52 = vpop.permute.xlu1 %876 }
 0x55b   :  { %v880_v54 = vmul.f32 %v877_v52, %v2470_v32  ;;  %v919_v9 = vpop.permute.xlu0 %918  ;;  %v2012_v52 = vpack.c.bf16 %v962_v50, %v961_v49 }
 0x55c   :  { %v922_v23 = vmul.f32 %v919_v9, %v2486_v61  ;;  %v963_v9 = vld [vmem:[%s2623_s8 + $0x8] sm:$0xff] }
 0x55d   :  { %885 = vrot.lane.b32.xlu1 %v880_v54, %s2122_s27  ;;  %v2020_v54 = vpack.c.bf16 %v956_v53, %v955_v51 }
 0x55f   :  { %v897_v58 = vpop.permute.xlu1 %896 }
 0x560   :  { %v900_v27 = vmul.f32 %v897_v58, %v2470_v32 }
 0x561   :  { %883 = vrot.lane.b32.xlu1 %v879_v57, %s2122_s27 }
 0x563   :  { %v893_v60 = vpop.permute.xlu1 %892 }
 0x564   :  { %v899_v25 = vmul.f32 %v893_v60, %v2466_v48 }
 0x565   :  { %905 = vrot.lane.b32.xlu1 %v900_v27, %s2123_s1 }
 0x566   :  { %903 = vrot.lane.b32.xlu0 %v899_v25, %s2123_s1  ;;  %v1577_v25 = vld [vmem:[%s2624_s9 + $0x4] ss:$0 sm:$0xff] }
 0x568   :  { %v927_v40 = vpop.permute.xlu1 %926 }
 0x569   :  { %v933_v1 = vmul.f32 %v927_v40, %v2482_v59 }
 0x56b   :  { %937 = vrot.lane.b32.xlu0 %v933_v1, %s2122_s27 }
 0x56c   :  { %v931_v2 = vpop.permute.xlu1 %930 }
 0x56d   :  { %v934_v3 = vmul.f32 %v931_v2, %v2486_v61  ;;  %v953_v61 = vld [vmem:[%s2622_s7 + $0x40] sm:$0xff] }
 0x56e   :  { %v2016_v33 = vpack.c.bf16 %v954_v30, %v953_v61  ;;  %v1583_v30 = vld [vmem:[%s2624_s9 + $0x6] ss:$0 sm:$0xff] }
 0x56f   :  { %939 = vrot.lane.b32.xlu1 %v934_v3, %s2122_s27 }
 0x571   :  { %v867_v4 = vpop.permute.xlu1 %866 }
 0x572   :  { %v870_v12 = vmul.f32 %v867_v4, %v2470_v32  ;;  %v951_v32 = vld [vmem:[%s2622_s7 + $0x30] sm:$0xff] }
 0x575   :  { %v862_v5 = vpop.permute.xlu1 %861 }
 0x576   :  { %v869_v10 = vmul.f32 %v862_v5, %v2466_v48 }
 0x579   :  { %v914_v7 = vpop.permute.xlu1 %913 }
 0x57a   :  { %v921_v15 = vmul.f32 %v914_v7, %v2482_v59  ;;  %v952_v59 = vld [vmem:[%s2622_s7 + $0x38] sm:$0xff] }
 0x57b   :  { %v2004_v29 = vpack.c.bf16 %v952_v59, %v951_v32  ;;  %v1575_v32 = vld [vmem:[%s2624_s9 + $0x2] ss:$0 sm:$0xff] }
 0x57d   :  { %2005 = vmatprep.subr.bf16.mxu1 %v2004_v29 }
 0x57e   :  { %2007 = vmatpush3.bf16.msra.mxu1 %v2004_v29  ;;  %v1576_v29 = vld [vmem:[%s2624_s9 + $0x3] ss:$0 sm:$0xff] }
 0x57f   :  { %2017 = vmatprep.subr.bf16.mxu1 %v2016_v33 }
 0x5cf   :  { %v886_v8 = vpop.permute.xlu1 %885 }
 0x5d0   :  { %v890_v19 = vadd.f32 %v886_v8, %v870_v12  ;;  %v965_v12 = vld [vmem:[%s2623_s8 + $0x28] sm:$0xff] }
 0x5d3   :  { %v884_v6 = vpop.permute.xlu1 %883 }
 0x5d4   :  { %v889_v11 = vadd.f32 %v884_v6, %v869_v10  ;;  %v964_v10 = vld [vmem:[%s2623_s8 + $0x18] sm:$0xff] }
 0x5d7   :  { %v906_v17 = vpop.permute.xlu1 %905 }
 0x5d8   :  { %v904_v13 = vpop.permute.xlu0 %903  ;;  %v910_v21 = vadd.f32 %v906_v17, %v890_v19  ;;  %v1580_v19 = vld [vmem:[%s2624_s9 + $0x5] ss:$0 sm:$0xff] }
 0x5d9   :  { %v909_v18 = vadd.f32 %v904_v13, %v889_v11  ;;  %v2028_v11 = vpack.c.bf16 %v964_v10, %v963_v9  ;;  %v966_v13 = vld [vmem:[%s2623_s8 + $0x38] sm:$0xff] }
 0x5da   :  { %v924_v26 = vadd.f32 %v922_v23, %v910_v21 }
 0x5db   :  { %v923_v20 = vadd.f32 %v921_v15, %v909_v18  ;;  %v2032_v15 = vpack.c.bf16 %v966_v13, %v965_v12 }
 0x5dd   :  { %v938_v22 = vpop.permute.xlu0 %937 }
 0x5de   :  { %v943_v24 = vadd.f32 %v938_v22, %v923_v20 }
 0x5e0   :  { %1826 = vmatprep.mubr.msk.f32.mxu0 %vm374_vm1, %v943_v24 }
 0x5e1   :  { %v940_v28 = vpop.permute.xlu1 %939 }
 0x5e2   :  { %v944_v48 = vadd.f32 %v940_v28, %v924_v26 }
 0x5e4   :  { %1827 = vmatmul.mubr.msk.f32.vlgmr.msra.gmra.mrb[6].mxu0 %vm374_vm1, %v944_v48 }
 0x5e5   :  { %2011 = vmatpush3.bf16.msra.mxu0 %v2008_v14 }
 0x5e6   :  { %2013 = vmatprep.subr.bf16.mxu0 %v2012_v52 }
 0x5e9   :  { %2015 = vmatpush3.bf16.msra.mxu0 %v2012_v52 }
 0x5ea   :  { %2029 = vmatprep.subr.bf16.mxu0 %v2028_v11 }
 0x6b7   :  { %v1828_v35 = vpop.f32.mrb[6].mxu0 }
 0x6b8   :  { %v1050_v16 = vadd.f32 %v1828_v35, %v1567_v34  ;;  %v1044_v36 = vpop.f32.mrb[7].mxu0 }
 0x6b9   :  { %v1045_v37 = vadd.f32 %v1567_v34, %v1044_v36 }
 0x6ba   :  { %v1056_v38 = vmul.f32 0.1, %v1050_v16  ;;  %vm1054_vm13 = vcmp.ge.f32.partialorder %v1050_v16, 0.0 }
 0x6bb   :  { %vm1053_vm14 = vcmp.ge.f32.partialorder %v1045_v37, 0.0  ;;  %v1055_v39 = vmul.f32 0.1, %v1045_v37 }
 0x6bc   :  { %v1058_v44 = vsel %vm1054_vm13, %v1050_v16, %v1056_v38 }
 0x6bd   :  { %v1057_v41 = vsel %vm1053_vm14, %v1045_v37, %v1055_v39 }
 0x6be   :  { %1837 = vmatprep.mubr.msk.f32.mxu1 %vm374_vm1, %v1057_v41 }
 0x6bf   :  { %1838 = vmatmul.mubr.msk.f32.vlgmr.msra.gmra.mrb[6].mxu1 %vm374_vm1, %v1058_v44 }
 0x6c0   :  { %2019 = vmatpush3.bf16.msra.mxu1 %v2016_v33  ;;  %1855 = vmatprep.mubr.msk.f32.mxu1 %vm1253_vm15, %v1246_v43 }
 0x6c1   :  { %2021 = vmatprep.subr.bf16.mxu1 %v2020_v54 }
 0x6c3   :  { %1856 = vmatmul.mubr.msk.f32.vlgmr.msra.gmra.mrb[8].mxu1 %vm1253_vm15, %v1247_v45 }
 0x6c4   :  { %2023 = vmatpush3.bf16.msra.mxu1 %v2020_v54 }
 0x6c5   :  { %2025 = vmatprep.subr.bf16.mxu1 %v2024_v56 }
 0x6c8   :  { %2027 = vmatpush3.bf16.msra.mxu1 %v2024_v56 }
 0x792   :  { %v1839_v57 = vpop.f32.mrb[6].mxu1 }
 0x793   :  { %v1142_v58 = vadd.f32 %v1839_v57, %v1570_v42  ;;  %v1136_v27 = vpop.f32.mrb[7].mxu1 }
 0x794   :  { %v1137_v60 = vadd.f32 %v1570_v42, %v1136_v27 }
 0x795   :  { %v1148_v62 = vmul.f32 0.05, %v1142_v58  ;;  %vm1146_vm0 = vcmp.ge.f32.partialorder %v1142_v58, 0.0 }
 0x796   :  { %vm1145_vm2 = vcmp.ge.f32.partialorder %v1137_v60, 0.0  ;;  %v1147_v63 = vmul.f32 0.05, %v1137_v60  ;;  %v1857_v0 = vpop.f32.mrb[8].mxu1 }
 0x797   :  { %v1332_v40 = vadd.f32 %v1857_v0, %v1577_v25  ;;  %v1326_v1 = vpop.f32.mrb[9].mxu1  ;;  %v1150_v4 = vsel %vm1146_vm0, %v1142_v58, %v1148_v62 }
 0x798   :  { %v1327_v2 = vadd.f32 %v1577_v25, %v1326_v1  ;;  %v1149_v3 = vsel %vm1145_vm2, %v1137_v60, %v1147_v63 }
 0x799   :  { %v1338_v5 = vmul.f32 0.12, %v1332_v40  ;;  %1848 = vmatprep.mubr.msk.f32.mxu0 %vm374_vm1, %v1149_v3  ;;  %vm1336_vm3 = vcmp.ge.f32.partialorder %v1332_v40, 0.0 }
 0x79a   :  { %vm1335_vm4 = vcmp.ge.f32.partialorder %v1327_v2, 0.0  ;;  %v1337_v7 = vmul.f32 0.12, %v1327_v2  ;;  %1849 = vmatmul.mubr.msk.f32.vlgmr.msra.gmra.mrb[8].mxu0 %vm374_vm1, %v1150_v4 }
 0x79b   :  { %v1340_v6 = vsel %vm1336_vm3, %v1332_v40, %v1338_v5  ;;  %2031 = vmatpush3.bf16.msra.mxu0 %v2028_v11 }
 0x79c   :  { %v1339_v8 = vsel %vm1335_vm4, %v1327_v2, %v1337_v7  ;;  %2033 = vmatprep.subr.bf16.mxu0 %v2032_v15 }
 0x79d   :  { %1866 = vmatprep.mubr.msk.f32.mxu1 %vm374_vm1, %v1339_v8 }
 0x79e   :  { %1867 = vmatmul.mubr.msk.f32.vlgmr.msra.gmra.mrb[10].mxu1 %vm374_vm1, %v1340_v6 }
 0x79f   :  { %2035 = vmatpush3.bf16.msra.mxu0 %v2032_v15 }
 0x86d   :  { %v1850_v17 = vpop.f32.mrb[8].mxu0 }
 0x86e   :  { %v1223_v18 = vpop.f32.mrb[9].mxu0  ;;  %v1238_v59 = vmul.f32 %v1850_v17, %v1575_v32 }
 0x86f   :  { %v1237_v61 = vmul.f32 %v1575_v32, %v1223_v18 }
 0x870   :  { %v1245_v34 = vadd.f32 %v1576_v29, %v1238_v59 }
 0x871   :  { %v1868_v20 = vpop.f32.mrb[10].mxu1  ;;  %v1244_v36 = vadd.f32 %v1576_v29, %v1237_v61 }
 0x872   :  { %v1424_v21 = vadd.f32 %v1868_v20, %v1580_v19  ;;  %v1418_v22 = vpop.f32.mrb[11].mxu1 }
 0x873   :  { %v1419_v23 = vadd.f32 %v1580_v19, %v1418_v22 }
 0x874   :  { %v1430_v24 = vmul.f32 0.18, %v1424_v21  ;;  %vm1428_vm5 = vcmp.ge.f32.partialorder %v1424_v21, 0.0 }
 0x875   :  { %vm1427_vm6 = vcmp.ge.f32.partialorder %v1419_v23, 0.0  ;;  %v1429_v26 = vmul.f32 0.18, %v1419_v23 }
 0x876   :  { %v1432_v48 = vsel %vm1428_vm5, %v1424_v21, %v1430_v24 }
 0x877   :  { %v1431_v28 = vsel %vm1427_vm6, %v1419_v23, %v1429_v26 }
 0x878   :  { %1877 = vmatprep.mubr.msk.f32.mxu0 %vm374_vm1, %v1431_v28 }
 0x879   :  { %1878 = vmatmul.mubr.msk.f32.vlgmr.msra.gmra.mrb[10].mxu0 %vm374_vm1, %v1432_v48 }
 0x94c   :  { %v1879_v33 = vpop.f32.mrb[10].mxu0 }
 0x94d   :  { %v1516_v35 = vadd.f32 %v1879_v33, %v1583_v30  ;;  %v1510_v16 = vpop.f32.mrb[11].mxu0 }
 0x94e   :  { %v1511_v37 = vadd.f32 %v1583_v30, %v1510_v16 }
 0x94f   :  { %v1520_v38 = vadd.f32 %v1516_v35, %v1245_v34 }
 0x950   :  { %v1519_v39 = vadd.f32 %v1511_v37, %v1244_v36 }
 0x951   :  { %1522 = vst [vmem:[#allocation2 + $0x8] sm:$0xff] %v1520_v38 }
 0x952   :  { %1521 = vst [vmem:[#allocation2] sm:$0xff] %v1519_v39 }
 0x953   :  { %2106 = shalt.err (!%p2103_p4)
}
 0x954   :  { %s2107_s13 = scalar_lea.hbm %s2625_s10, 256 }
 0x955   :  { %p2108_p5 = scmp.ne.s32.totalorder %s2625_s10, %s2107_s13  ;;  %p2111_p6 = scmp.lt.u32.totalorder %s2107_s13, %s2625_s10 }
 0x957   :  { %p2113_p7 = pnand %p2111_p6, %p2108_p5 }
 0x959   :  { %2116 = shalt.err (!%p2113_p7)
}
 0x95a   :  { %s2125_s17 = smov 128   ;;  %s2126_s5 = smov 8  }
 0x95b   :  { %1534 = dma.vmem_to_hbm [thread:$0]  %s1529_s2, 256, %s2625_s10, [#allocation3], %s2125_s17, %s2125_s17, %s2126_s5  }
 0x95c   :  { %2117 = dma.done.wait [#allocation3], 256  }
 0x95d   :  { %2118 = vsyncadd [#allocation3], 4294967040 }
 0x95e   :  { %1538 = vsyncpa [#allocation3], 1 }

</bundles_post_ra>
